<compile_context>
chip_gen: v6e
topology: v6e:2x2x1
jax: 0.10.0
libtpu: 0.0.40
codegen_flags: <defaults>
</compile_context>

<pallas_src>
import jax
import jax.numpy as jnp
from jax.experimental import pallas as pl
from jax.experimental.pallas import tpu as pltpu

K_IN = 784
OUT_DIM = 10


def _round_up(n: int, m: int) -> int:
    return (n + m - 1) // m * m


def _choose_block_b(B: int, cap: int = 1024) -> int:
    """Largest 128-multiple batch tile <= cap that still leaves >= 2 grid steps when possible."""
    b128 = _round_up(B, 128)
    if b128 <= 2 * 128:
        return 128                       # tiny batches: nothing to amortize / shard
    half = _round_up(b128 // 2, 128)     # keep >= 2 steps so v7x can use both TensorCores
    return max(128, min(cap, half))


def mnist2nn_kernel(x_ref, w1_ref, b1_ref, w2_ref, b2_ref, w3_ref, b3_ref, o_ref):
    # f32 tile is DMA'd once; VPU cast to bf16 hides under the tile DMA.
    x = x_ref[...].astype(jnp.bfloat16)
    # Layer 1: bf16 x bf16 on the MXU, f32 accumulation; bias + ReLU in f32.
    h1 = jnp.dot(x, w1_ref[...], preferred_element_type=jnp.float32)
    h1 = jnp.maximum(h1 + b1_ref[...], 0.0).astype(jnp.bfloat16)
    # Layer 2
    h2 = jnp.dot(h1, w2_ref[...], preferred_element_type=jnp.float32)
    h2 = jnp.maximum(h2 + b2_ref[...], 0.0).astype(jnp.bfloat16)
    # Layer 3 (unpadded 10-wide output; full f32 logits)
    y = jnp.dot(h2, w3_ref[...], preferred_element_type=jnp.float32)
    o_ref[...] = (y + b3_ref[...]).astype(o_ref.dtype)


def prepare_params(params):
    """One-time wrapper-side prep: bf16 weights, f32 biases. No HBM-side padding."""
    return {
        "w1": params["w1"].astype(jnp.bfloat16),   # (784, L1)
        "b1": params["b1"].astype(jnp.float32),    # (1, L1)
        "w2": params["w2"].astype(jnp.bfloat16),   # (L1, L2)
        "b2": params["b2"].astype(jnp.float32),    # (1, L2)
        "w3": params["w3"].astype(jnp.bfloat16),   # (L2, 10)
        "b3": params["b3"].astype(jnp.float32),    # (1, 10)
    }


def mnist2nn_forward(x, p, *, block_b=None):
    """x: (B, 784) float32; p: output of prepare_params. Returns (B, 10) float32."""
    B, K = x.shape
    assert K == K_IN, K
    L1 = p["w1"].shape[1]
    L2 = p["w2"].shape[1]

    if block_b is None:
        block_b = _choose_block_b(B)
    grid = (pl.cdiv(B, block_b),)

    flops = 2 * B * (K_IN * L1 + L1 * L2 + L2 * OUT_DIM)
    bytes_accessed = (
        B * K_IN * 4                                          # f32 activations in
        + (p["w1"].size + p["w2"].size + p["w3"].size) * 2    # bf16 weights (resident)
        + (p["b1"].size + p["b2"].size + p["b3"].size) * 4    # f32 biases
        + B * OUT_DIM * 4                                     # f32 logits out
    )

    out = pl.pallas_call(
        mnist2nn_kernel,
        out_shape=jax.ShapeDtypeStruct((B, OUT_DIM), jnp.float32),
        grid=grid,
        in_specs=[
            pl.BlockSpec((block_b, K_IN), lambda i: (i, 0)),   # x: tiled over batch (f32)
            pl.BlockSpec((K_IN, L1), lambda i: (0, 0)),        # w1: resident
            pl.BlockSpec((1, L1), lambda i: (0, 0)),           # b1: resident
            pl.BlockSpec((L1, L2), lambda i: (0, 0)),          # w2: resident
            pl.BlockSpec((1, L2), lambda i: (0, 0)),           # b2: resident
            pl.BlockSpec((L2, OUT_DIM), lambda i: (0, 0)),     # w3: resident
            pl.BlockSpec((1, OUT_DIM), lambda i: (0, 0)),      # b3: resident
        ],
        out_specs=pl.BlockSpec((block_b, OUT_DIM), lambda i: (i, 0)),
        compiler_params=pltpu.CompilerParams(
            dimension_semantics=("parallel",),        # shard batch tiles across TCs (v7x)
            vmem_limit_bytes=32 * 1024 * 1024,        # ample for ~11 MiB working set
        ),
        cost_estimate=pl.CostEstimate(
            flops=flops, transcendentals=0, bytes_accessed=bytes_accessed),
    )(x, p["w1"], p["b1"], p["w2"], p["b2"], p["w3"], p["b3"])

    return out


def init_params(key, layer1_size, layer2_size):
    """Deterministic init mimicking nn.Linear's U(-1/sqrt(fan_in), 1/sqrt(fan_in))."""
    ks = jax.random.split(key, 6)

    def linear(kw, kb, fan_in, fan_out):
        bound = 1.0 / jnp.sqrt(fan_in)
        # stored transposed: (in, out)
        w = jax.random.uniform(kw, (fan_in, fan_out), jnp.float32, -bound, bound)
        b = jax.random.uniform(kb, (1, fan_out), jnp.float32, -bound, bound)
        return w, b

    w1, b1 = linear(ks[0], ks[1], K_IN, layer1_size)
    w2, b2 = linear(ks[2], ks[3], layer1_size, layer2_size)
    w3, b3 = linear(ks[4], ks[5], layer2_size, OUT_DIM)
    return {"w1": w1, "b1": b1, "w2": w2, "b2": b2, "w3": w3, "b3": b3}


def reference_forward(x, p):
    """Pure-JAX reference on the SAME prepared (bf16-weight, f32-accum) compute path."""
    xb = x.astype(jnp.bfloat16)
    h1 = jnp.dot(xb, p["w1"], preferred_element_type=jnp.float32) + p["b1"]
    h1 = jnp.maximum(h1, 0.0).astype(jnp.bfloat16)
    h2 = jnp.dot(h1, p["w2"], preferred_element_type=jnp.float32) + p["b2"]
    h2 = jnp.maximum(h2, 0.0).astype(jnp.bfloat16)
    y = jnp.dot(h2, p["w3"], preferred_element_type=jnp.float32) + p["b3"]
    return y


if __name__ == "__main__":
    key = jax.random.PRNGKey(0)
    k_param, k_x1, k_x2 = jax.random.split(key, 3)

    layer1_size, layer2_size = 256, 128
    raw_params = init_params(k_param, layer1_size, layer2_size)
    params = prepare_params(raw_params)

    # Small batch: single (partial) 128-row tile, exercises masked boundary block.
    x_small = jax.random.normal(k_x1, (8, K_IN), jnp.float32)
    y_small = jax.block_until_ready(mnist2nn_forward(x_small, params))
    assert y_small.shape == (8, OUT_DIM), y_small.shape
    y_ref_small = reference_forward(x_small, params)
    assert jnp.allclose(y_small, y_ref_small, atol=1e-2, rtol=1e-2), "mismatch (small batch)"

    # Non-multiple-of-tile batch exercises the cdiv grid + masked boundary store path.
    x_big = jax.random.normal(k_x2, (300, K_IN), jnp.float32)
    y_big = jax.block_until_ready(mnist2nn_forward(x_big, params))
    assert y_big.shape == (300, OUT_DIM), y_big.shape
    y_ref_big = reference_forward(x_big, params)
    assert jnp.allclose(y_big, y_ref_big, atol=1e-2, rtol=1e-2), "mismatch (large batch)"

    print("KERNEL_OK")
</pallas_src>

<mosaic_0001>
module attributes {stable_mosaic.version = 11 : i64} {
  func.func @mnist2nn_kernel(%arg0: i32, %arg1: memref<128x784xf32, #tpu.memory_space<vmem>>, %arg2: memref<784x256xbf16, #tpu.memory_space<vmem>>, %arg3: memref<1x256xf32, #tpu.memory_space<vmem>>, %arg4: memref<256x128xbf16, #tpu.memory_space<vmem>>, %arg5: memref<1x128xf32, #tpu.memory_space<vmem>>, %arg6: memref<128x10xbf16, #tpu.memory_space<vmem>>, %arg7: memref<1x10xf32, #tpu.memory_space<vmem>>, %arg8: memref<128x10xf32, #tpu.memory_space<vmem>>) attributes {dimension_semantics = [#tpu.dimension_semantics<parallel>], iteration_bounds = array<i64: 1>, scalar_prefetch = 0 : i64, scratch_operands = 0 : i64, tpu.core_type = #tpu.core_type<tc>, window_params = [{transform_indices = @transform_0, window_bounds = array<i64: 128, 784>}, {pipeline_mode = #tpu.pipeline_mode<synchronous>, transform_indices = @transform_1, window_bounds = array<i64: 784, 256>}, {pipeline_mode = #tpu.pipeline_mode<synchronous>, transform_indices = @transform_2, window_bounds = array<i64: 1, 256>}, {pipeline_mode = #tpu.pipeline_mode<synchronous>, transform_indices = @transform_3, window_bounds = array<i64: 256, 128>}, {pipeline_mode = #tpu.pipeline_mode<synchronous>, transform_indices = @transform_4, window_bounds = array<i64: 1, 128>}, {pipeline_mode = #tpu.pipeline_mode<synchronous>, transform_indices = @transform_5, window_bounds = array<i64: 128, 10>}, {pipeline_mode = #tpu.pipeline_mode<synchronous>, transform_indices = @transform_6, window_bounds = array<i64: 1, 10>}, {transform_indices = @transform_7, window_bounds = array<i64: 128, 10>}]} {
    %c0 = arith.constant 0 : index
    %c0_0 = arith.constant 0 : index
    %0 = vector.load %arg1[%c0, %c0_0] : memref<128x784xf32, #tpu.memory_space<vmem>>, vector<128x784xf32>
    %1 = arith.truncf %0 : vector<128x784xf32> to vector<128x784xbf16>
    %c0_1 = arith.constant 0 : index
    %c0_2 = arith.constant 0 : index
    %2 = vector.load %arg2[%c0_1, %c0_2] : memref<784x256xbf16, #tpu.memory_space<vmem>>, vector<784x256xbf16>
    %cst = arith.constant dense<0.000000e+00> : vector<128x256xf32>
    %3 = tpu.matmul %1, %2, %cst {dimension_numbers = #tpu.dot_dimension_numbers<[1], [0], [0], [1], [0, 0, 1, 1], [], []>} : vector<128x784xbf16>, vector<784x256xbf16>, vector<128x256xf32> -> vector<128x256xf32>
    %c0_3 = arith.constant 0 : index
    %c0_4 = arith.constant 0 : index
    %4 = vector.load %arg3[%c0_3, %c0_4] : memref<1x256xf32, #tpu.memory_space<vmem>>, vector<1x256xf32>
    %5 = vector.broadcast %4 : vector<1x256xf32> to vector<128x256xf32>
    %6 = arith.addf %3, %5 : vector<128x256xf32>
    %cst_5 = arith.constant 0.000000e+00 : f32
    %7 = vector.broadcast %cst_5 : f32 to vector<128x256xf32>
    %8 = arith.maximumf %6, %7 : vector<128x256xf32>
    %9 = arith.truncf %8 : vector<128x256xf32> to vector<128x256xbf16>
    %c0_6 = arith.constant 0 : index
    %c0_7 = arith.constant 0 : index
    %10 = vector.load %arg4[%c0_6, %c0_7] : memref<256x128xbf16, #tpu.memory_space<vmem>>, vector<256x128xbf16>
    %cst_8 = arith.constant dense<0.000000e+00> : vector<128x128xf32>
    %11 = tpu.matmul %9, %10, %cst_8 {dimension_numbers = #tpu.dot_dimension_numbers<[1], [0], [0], [1], [0, 0, 1, 1], [], []>} : vector<128x256xbf16>, vector<256x128xbf16>, vector<128x128xf32> -> vector<128x128xf32>
    %c0_9 = arith.constant 0 : index
    %c0_10 = arith.constant 0 : index
    %12 = vector.load %arg5[%c0_9, %c0_10] : memref<1x128xf32, #tpu.memory_space<vmem>>, vector<1x128xf32>
    %13 = vector.broadcast %12 : vector<1x128xf32> to vector<128x128xf32>
    %14 = arith.addf %11, %13 : vector<128x128xf32>
    %cst_11 = arith.constant 0.000000e+00 : f32
    %15 = vector.broadcast %cst_11 : f32 to vector<128x128xf32>
    %16 = arith.maximumf %14, %15 : vector<128x128xf32>
    %17 = arith.truncf %16 : vector<128x128xf32> to vector<128x128xbf16>
    %c0_12 = arith.constant 0 : index
    %c0_13 = arith.constant 0 : index
    %18 = vector.load %arg6[%c0_12, %c0_13] : memref<128x10xbf16, #tpu.memory_space<vmem>>, vector<128x10xbf16>
    %cst_14 = arith.constant dense<0.000000e+00> : vector<128x10xf32>
    %19 = tpu.matmul %17, %18, %cst_14 {dimension_numbers = #tpu.dot_dimension_numbers<[1], [0], [0], [1], [0, 0, 1, 1], [], []>} : vector<128x128xbf16>, vector<128x10xbf16>, vector<128x10xf32> -> vector<128x10xf32>
    %c0_15 = arith.constant 0 : index
    %c0_16 = arith.constant 0 : index
    %20 = vector.load %arg7[%c0_15, %c0_16] : memref<1x10xf32, #tpu.memory_space<vmem>>, vector<1x10xf32>
    %21 = vector.broadcast %20 : vector<1x10xf32> to vector<128x10xf32>
    %22 = arith.addf %19, %21 : vector<128x10xf32>
    %c0_17 = arith.constant 0 : index
    %c0_18 = arith.constant 0 : index
    %23 = vector.load %arg8[%c0_17, %c0_18] : memref<128x10xf32, #tpu.memory_space<vmem>>, vector<128x10xf32>
    tpu.vector_store %arg8[%c0_17, %c0_18], %22 {strides = array<i32>} : memref<128x10xf32, #tpu.memory_space<vmem>>, vector<128x10xf32>,
    return
  }
  func.func @transform_0(%arg0: i32) -> (i32, i32) {
    %c0_i32 = arith.constant 0 : i32
    %c0_i32_0 = arith.constant 0 : i32
    return %arg0, %c0_i32 : i32, i32
  }
  func.func @transform_1(%arg0: i32) -> (i32, i32) {
    %c0_i32 = arith.constant 0 : i32
    %c0_i32_0 = arith.constant 0 : i32
    %c0_i32_1 = arith.constant 0 : i32
    return %c0_i32, %c0_i32_0 : i32, i32
  }
  func.func @transform_2(%arg0: i32) -> (i32, i32) {
    %c0_i32 = arith.constant 0 : i32
    %c0_i32_0 = arith.constant 0 : i32
    %c0_i32_1 = arith.constant 0 : i32
    return %c0_i32, %c0_i32_0 : i32, i32
  }
  func.func @transform_3(%arg0: i32) -> (i32, i32) {
    %c0_i32 = arith.constant 0 : i32
    %c0_i32_0 = arith.constant 0 : i32
    %c0_i32_1 = arith.constant 0 : i32
    return %c0_i32, %c0_i32_0 : i32, i32
  }
  func.func @transform_4(%arg0: i32) -> (i32, i32) {
    %c0_i32 = arith.constant 0 : i32
    %c0_i32_0 = arith.constant 0 : i32
    %c0_i32_1 = arith.constant 0 : i32
    return %c0_i32, %c0_i32_0 : i32, i32
  }
  func.func @transform_5(%arg0: i32) -> (i32, i32) {
    %c0_i32 = arith.constant 0 : i32
    %c0_i32_0 = arith.constant 0 : i32
    %c0_i32_1 = arith.constant 0 : i32
    return %c0_i32, %c0_i32_0 : i32, i32
  }
  func.func @transform_6(%arg0: i32) -> (i32, i32) {
    %c0_i32 = arith.constant 0 : i32
    %c0_i32_0 = arith.constant 0 : i32
    %c0_i32_1 = arith.constant 0 : i32
    return %c0_i32, %c0_i32_0 : i32, i32
  }
  func.func @transform_7(%arg0: i32) -> (i32, i32) {
    %c0_i32 = arith.constant 0 : i32
    %c0_i32_0 = arith.constant 0 : i32
    return %arg0, %c0_i32 : i32, i32
  }
}

</mosaic_0001>

<bundles_post_ra>
// kernel: tpu_custom_call.1
= control target key start
LH: loop header
LB: loop body
LE: loop exit
PB: predicated region body
PF: predicated region fallthrough
CT: control target
= control target key end

     0   :  { %12 = vsyncpa [#allocation3], 0  ;;  %s2991_s0 = inlined_call_operand.vmem [shape: f32[8,784], index: 0, kind: input, shape index: {}]   ;;  %s2992_s1 = inlined_call_operand.hbm [shape: bf16[784,256], index: 1, kind: input, shape index: {}]   ;;  %s2993_s2 = inlined_call_operand.vmem [shape: f32[1,256], index: 2, kind: input, shape index: {}]   ;;  %s2994_s3 = inlined_call_operand.hbm [shape: bf16[256,128], index: 3, kind: input, shape index: {}]   ;;  %s2995_s4 = inlined_call_operand.vmem [shape: f32[1,128], index: 4, kind: input, shape index: {}]   ;;  %s2996_s5 = inlined_call_operand.vmem [shape: bf16[128,10], index: 5, kind: input, shape index: {}]   ;;  %s2997_s6 = inlined_call_operand.vmem [shape: f32[1,10], index: 6, kind: input, shape index: {}]   ;;  %s2998_s7 = inlined_call_operand.hbm [shape: f32[8,10], index: 7, kind: output, shape index: {}]  }
   0x1   :  { %13 = vsyncpa [#allocation6], 0 }
   0x2   :  { %14 = vsyncpa [#allocation4], 0  ;;  %s2329_s24 = smov [#allocation2]  }
   0x3   :  { %s22_s25 = sshll.u32 %s2329_s24, 4  ;;  %s23_s25 = int_to_ptr.vmem [resolvable:$true] %s22_s25 }
   0x4   :  { %s2271_s26 = scalar_lea.vmem %s23_s25, 12544  ;;  %p2276_p1 = scmp.lt.s32.totalorder %s23_s25, %s23_s25 }
   0x5   :  { %p2272_p0 = scmp.ne.s32.totalorder %s23_s25, %s2271_s26  ;;  %p2277_p2 = scmp.lt.s32.totalorder %s2271_s26, %s2271_s26 }
   0x7   :  { %p2278_p3 = por %p2277_p2, %p2276_p1 }
   0x9   :  { %p2279_p4 = pnand %p2278_p3, %p2272_p0 }
   0xb   :  { %2282 = shalt.err (!%p2279_p4)
}
   0xc   :  { %s2330_s27 = smov 128   ;;  %s2331_s28 = smov 8  }
   0xd   :  { %28 = dma.hbm_to_vmem [thread:$0]  %s2992_s1, 12544, %s23_s25, [#allocation3], %s2330_s27, %s2330_s27, %s2331_s28  }
   0xe   :  { %s2332_s8 = smov [#allocation5]  }
   0xf   :  { %s36_s9 = sshll.u32 %s2332_s8, 4  ;;  %s37_s9 = int_to_ptr.vmem [resolvable:$true] %s36_s9 }
  0x10   :  { %s2291_s10 = scalar_lea.vmem %s37_s9, 2048  ;;  %p2296_p6 = scmp.lt.s32.totalorder %s37_s9, %s37_s9 }
  0x11   :  { %p2292_p5 = scmp.ne.s32.totalorder %s37_s9, %s2291_s10  ;;  %p2297_p7 = scmp.lt.s32.totalorder %s2291_s10, %s2291_s10 }
  0x13   :  { %p2298_p8 = por %p2297_p7, %p2296_p6 }
  0x15   :  { %p2299_p9 = pnand %p2298_p8, %p2292_p5 }
  0x17   :  { %2302 = shalt.err (!%p2299_p9)
}
  0x18   :  { %s2333_s11 = smov 64   ;;  %s2334_s12 = smov 4  }
  0x19   :  { %42 = dma.hbm_to_vmem [thread:$0]  %s2994_s3, 2048, %s37_s9, [#allocation6], %s2333_s11, %s2333_s11, %s2334_s12  }
  0x1a   :  { %2323 = dma.done.wait [#allocation3], 12544  }
  0x1b   :  { %2324 = vsyncadd [#allocation3], 4294954752 }
  0x1c   :  { %2325 = dma.done.wait [#allocation6], 2048  }
  0x1d   :  { %2326 = vsyncadd [#allocation6], 4294965248  ;;  %v2092_v0 = vld [vmem:[#allocation2 + $0x74] ss:$8 sps:$4 sm:$0xff]   ;;  %v2096_v2 = vld [vmem:[#allocation2 + $0x70] ss:$8 sps:$4 sm:$0xff]  }
  0x1e   :  { %v2094_v1 = vld [vmem:[#allocation2 + $0x174] ss:$8 sps:$4 sm:$0xff]   ;;  %849 = vmatprep.subr.bf16.mxu0 %v2092_v0  ;;  %v2097_v3 = vld [vmem:[#allocation2 + $0x170] ss:$8 sps:$4 sm:$0xff]   ;;  %v2098_v4 = vld [vmem:[#allocation2 + $0x64] ss:$8 sps:$4 sm:$0xff]  }
  0x1f   :  { %962 = vmatprep.subr.bf16.mxu1 %v2094_v1  ;;  %850 = vmatpush1.bf16.msra.mxu0 %v2096_v2  ;;  %v2100_v5 = vld [vmem:[#allocation2 + $0x164] ss:$8 sps:$4 sm:$0xff]   ;;  %v2102_v6 = vld [vmem:[#allocation2 + $0x60] ss:$8 sps:$4 sm:$0xff]   ;;  %v2104_v8 = vld [vmem:[#allocation2 + $0x54] ss:$8 sps:$4 sm:$0xff]  }
  0x20   :  { %963 = vmatpush1.bf16.msra.mxu1 %v2097_v3  ;;  %851 = vmatprep.subr.bf16.mxu0 %v2098_v4  ;;  %v2103_v7 = vld [vmem:[#allocation2 + $0x160] ss:$8 sps:$4 sm:$0xff]   ;;  %v2106_v9 = vld [vmem:[#allocation2 + $0x154] ss:$8 sps:$4 sm:$0xff]   ;;  %v2108_v10 = vld [vmem:[#allocation2 + $0x50] ss:$8 sps:$4 sm:$0xff]  }
  0x21   :  { %964 = vmatprep.subr.bf16.mxu1 %v2100_v5  ;;  %v2109_v11 = vld [vmem:[#allocation2 + $0x150] ss:$8 sps:$4 sm:$0xff]   ;;  %v2110_v12 = vld [vmem:[#allocation2 + $0x44] ss:$8 sps:$4 sm:$0xff]   ;;  %v2114_v14 = vld [vmem:[#allocation2 + $0x40] ss:$8 sps:$4 sm:$0xff]  }
  0x22   :  { %v2112_v13 = vld [vmem:[#allocation2 + $0x144] ss:$8 sps:$4 sm:$0xff]   ;;  %v2115_v15 = vld [vmem:[#allocation2 + $0x140] ss:$8 sps:$4 sm:$0xff]   ;;  %v2116_v16 = vld [vmem:[#allocation2 + $0x34] ss:$8 sps:$4 sm:$0xff]  }
  0x23   :  { %852 = vmatpush1.bf16.msra.mxu0 %v2102_v6  ;;  %v2118_v17 = vld [vmem:[#allocation2 + $0x134] ss:$8 sps:$4 sm:$0xff]   ;;  %v2120_v18 = vld [vmem:[#allocation2 + $0x30] ss:$8 sps:$4 sm:$0xff]   ;;  %v2122_v20 = vld [vmem:[#allocation2 + $0x24] ss:$8 sps:$4 sm:$0xff]  }
  0x24   :  { %965 = vmatpush1.bf16.msra.mxu1 %v2103_v7  ;;  %853 = vmatprep.subr.bf16.mxu0 %v2104_v8  ;;  %v2121_v19 = vld [vmem:[#allocation2 + $0x130] ss:$8 sps:$4 sm:$0xff]   ;;  %v2124_v21 = vld [vmem:[#allocation2 + $0x124] ss:$8 sps:$4 sm:$0xff]   ;;  %v2126_v22 = vld [vmem:[#allocation2 + $0x20] ss:$8 sps:$4 sm:$0xff]  }
  0x25   :  { %966 = vmatprep.subr.bf16.mxu1 %v2106_v9  ;;  %v2127_v23 = vld [vmem:[#allocation2 + $0x120] ss:$8 sps:$4 sm:$0xff]   ;;  %v2128_v24 = vld [vmem:[#allocation2 + $0x14] ss:$8 sps:$4 sm:$0xff]   ;;  %v2132_v26 = vld [vmem:[#allocation2 + $0x10] ss:$8 sps:$4 sm:$0xff]  }
  0x26   :  { %v2130_v25 = vld [vmem:[#allocation2 + $0x114] ss:$8 sps:$4 sm:$0xff]   ;;  %v2133_v27 = vld [vmem:[#allocation2 + $0x110] ss:$8 sps:$4 sm:$0xff]   ;;  %v2134_v28 = vld [vmem:[#allocation2 + $0x4] ss:$8 sps:$4 sm:$0xff]  }
  0x27   :  { %854 = vmatpush1.bf16.msra.mxu0 %v2108_v10  ;;  %v2136_v29 = vld [vmem:[#allocation2 + $0x104] ss:$8 sps:$4 sm:$0xff]   ;;  %v2138_v30 = vld [vmem:[#allocation2] ss:$8 sps:$4 sm:$0xff]   ;;  %v2140_v32 = vld [vmem:[#allocation2 + $0xf4] ss:$8 sps:$4 sm:$0xff]  }
  0x28   :  { %967 = vmatpush1.bf16.msra.mxu1 %v2109_v11  ;;  %855 = vmatprep.subr.bf16.mxu0 %v2110_v12  ;;  %v2139_v31 = vld [vmem:[#allocation2 + $0x100] ss:$8 sps:$4 sm:$0xff]   ;;  %v2142_v33 = vld [vmem:[#allocation2 + $0x1f4] ss:$8 sps:$4 sm:$0xff]   ;;  %v2144_v34 = vld [vmem:[#allocation2 + $0xf0] ss:$8 sps:$4 sm:$0xff]  }
  0x29   :  { %968 = vmatprep.subr.bf16.mxu1 %v2112_v13  ;;  %v2145_v35 = vld [vmem:[#allocation2 + $0x1f0] ss:$8 sps:$4 sm:$0xff]   ;;  %v2146_v36 = vld [vmem:[#allocation2 + $0xe4] ss:$8 sps:$4 sm:$0xff]   ;;  %v2150_v38 = vld [vmem:[#allocation2 + $0xe0] ss:$8 sps:$4 sm:$0xff]  }
  0x2a   :  { %v2148_v37 = vld [vmem:[#allocation2 + $0x1e4] ss:$8 sps:$4 sm:$0xff]   ;;  %v2151_v39 = vld [vmem:[#allocation2 + $0x1e0] ss:$8 sps:$4 sm:$0xff]   ;;  %v2152_v40 = vld [vmem:[#allocation2 + $0xd4] ss:$8 sps:$4 sm:$0xff]  }
  0x2b   :  { %856 = vmatpush1.bf16.msra.mxu0 %v2114_v14  ;;  %v2154_v41 = vld [vmem:[#allocation2 + $0x1d4] ss:$8 sps:$4 sm:$0xff]   ;;  %v2156_v42 = vld [vmem:[#allocation2 + $0xd0] ss:$8 sps:$4 sm:$0xff]   ;;  %v2158_v44 = vld [vmem:[#allocation2 + $0xc4] ss:$8 sps:$4 sm:$0xff]  }
  0x2c   :  { %969 = vmatpush1.bf16.msra.mxu1 %v2115_v15  ;;  %857 = vmatprep.subr.bf16.mxu0 %v2116_v16  ;;  %v2157_v43 = vld [vmem:[#allocation2 + $0x1d0] ss:$8 sps:$4 sm:$0xff]   ;;  %v2160_v45 = vld [vmem:[#allocation2 + $0x1c4] ss:$8 sps:$4 sm:$0xff]   ;;  %v2162_v50 = vld [vmem:[#allocation2 + $0xc0] ss:$8 sps:$4 sm:$0xff]  }
  0x2d   :  { %970 = vmatprep.subr.bf16.mxu1 %v2118_v17  ;;  %v57_v46 = vld [vmem:[%s2991_s0 + $0x8] sm:$0xff]  ;;  %v64_v47 = vld [vmem:[%s2991_s0 + $0x40] sm:$0xff]  ;;  %v59_v48 = vld [vmem:[%s2991_s0 + $0x18] sm:$0xff]  ;;  %vm824_vm0 = vcmask 130048   ;;  %vm1773_vm1 = vcmask 80896  }
  0x2e   :  { %v66_v49 = vld [vmem:[%s2991_s0 + $0x50] sm:$0xff]  ;;  %v2163_v51 = vld [vmem:[#allocation2 + $0x1c0] ss:$8 sps:$4 sm:$0xff]   ;;  %v169_v53 = vpack.c.bf16 %v64_v47, %v57_v46  ;;  %v2170_v58 = vld [vmem:[#allocation2 + $0xa4] ss:$8 sps:$4 sm:$0xff]  }
  0x2f   :  { %858 = vmatpush1.bf16.msra.mxu0 %v2120_v18  ;;  %v2164_v52 = vld [vmem:[#allocation2 + $0xb4] ss:$8 sps:$4 sm:$0xff]   ;;  %v171_v54 = vpack.c.bf16 %v66_v49, %v59_v48  ;;  %v2168_v56 = vld [vmem:[#allocation2 + $0xb0] ss:$8 sps:$4 sm:$0xff]   ;;  %v2172_v59 = vld [vmem:[#allocation2 + $0x1a4] ss:$8 sps:$4 sm:$0xff]  }
  0x30   :  { %971 = vmatpush1.bf16.msra.mxu1 %v2121_v19  ;;  %859 = vmatprep.subr.bf16.mxu0 %v2122_v20  ;;  %v2166_v55 = vld [vmem:[#allocation2 + $0x1b4] ss:$8 sps:$4 sm:$0xff]   ;;  %v2169_v57 = vld [vmem:[#allocation2 + $0x1b0] ss:$8 sps:$4 sm:$0xff]   ;;  %v2174_v60 = vld [vmem:[#allocation2 + $0xa0] ss:$8 sps:$4 sm:$0xff]  }
  0x31   :  { %972 = vmatprep.subr.bf16.mxu1 %v2124_v21  ;;  %881 = vmatprep.mubr.bf16.mxu0 %v169_v53  ;;  %v2175_v61 = vld [vmem:[#allocation2 + $0x1a0] ss:$8 sps:$4 sm:$0xff]   ;;  %v2176_v62 = vld [vmem:[#allocation2 + $0x94] ss:$8 sps:$4 sm:$0xff]   ;;  %v2180_v0 = vld [vmem:[#allocation2 + $0x90] ss:$8 sps:$4 sm:$0xff]  }
  0x32   :  { %994 = vmatprep.mubr.bf16.mxu1 %v171_v54  ;;  %v2178_v63 = vld [vmem:[#allocation2 + $0x194] ss:$8 sps:$4 sm:$0xff]   ;;  %v2181_v1 = vld [vmem:[#allocation2 + $0x190] ss:$8 sps:$4 sm:$0xff]   ;;  %v2182_v2 = vld [vmem:[#allocation2 + $0x84] ss:$8 sps:$4 sm:$0xff]  }
  0x33   :  { %860 = vmatpush1.bf16.msra.mxu0 %v2126_v22  ;;  %v2184_v3 = vld [vmem:[#allocation2 + $0x184] ss:$8 sps:$4 sm:$0xff]   ;;  %v2186_v4 = vld [vmem:[#allocation2 + $0x80] ss:$8 sps:$4 sm:$0xff]   ;;  %v63_v7 = vld [vmem:[%s2991_s0 + $0x38] sm:$0xff] }
  0x34   :  { %973 = vmatpush1.bf16.msra.mxu1 %v2127_v23  ;;  %861 = vmatprep.subr.bf16.mxu0 %v2128_v24  ;;  %v2187_v5 = vld [vmem:[#allocation2 + $0x180] ss:$8 sps:$4 sm:$0xff]   ;;  %v58_v8 = vld [vmem:[%s2991_s0 + $0x10] sm:$0xff]  ;;  %v71_v11 = vld [vmem:[%s2991_s0 + $0x78] sm:$0xff] }
  0x35   :  { %974 = vmatprep.subr.bf16.mxu1 %v2130_v25  ;;  %v56_v6 = vld [vmem:[%s2991_s0] sm:$0xff]  ;;  %v65_v9 = vld [vmem:[%s2991_s0 + $0x48] sm:$0xff]  ;;  %v2190_v10 = vld [vmem:[#allocation2 + $0x274] ss:$8 sps:$4 sm:$0xff]  }
  0x36   :  { %v78_v12 = vld [vmem:[%s2991_s0 + $0xb0] sm:$0xff]  ;;  %v168_v13 = vpack.c.bf16 %v63_v7, %v56_v6  ;;  %v170_v14 = vpack.c.bf16 %v65_v9, %v58_v8  ;;  %v73_v15 = vld [vmem:[%s2991_s0 + $0x88] sm:$0xff]  ;;  %v80_v16 = vld [vmem:[%s2991_s0 + $0xc0] sm:$0xff] }
  0x37   :  { %862 = vmatpush1.bf16.msra.mxu0 %v2132_v26  ;;  %v2188_v17 = vld [vmem:[#allocation2 + $0x270] ss:$8 sps:$4 sm:$0xff]   ;;  %v2193_v18 = vld [vmem:[#allocation2 + $0x264] ss:$8 sps:$4 sm:$0xff]   ;;  %v2191_v19 = vld [vmem:[#allocation2 + $0x260] ss:$8 sps:$4 sm:$0xff]   ;;  %v176_v20 = vpack.c.bf16 %v78_v12, %v71_v11  ;;  %v178_v21 = vpack.c.bf16 %v80_v16, %v73_v15 }
  0x38   :  { %975 = vmatpush1.bf16.msra.mxu1 %v2133_v27  ;;  %863 = vmatprep.subr.bf16.mxu0 %v2134_v28  ;;  %v70_v22 = vld [vmem:[%s2991_s0 + $0x70] sm:$0xff]  ;;  %v77_v23 = vld [vmem:[%s2991_s0 + $0xa8] sm:$0xff]  ;;  %v72_v24 = vld [vmem:[%s2991_s0 + $0x80] sm:$0xff] }
  0x39   :  { %976 = vmatprep.subr.bf16.mxu1 %v2136_v29  ;;  %v79_v25 = vld [vmem:[%s2991_s0 + $0xb8] sm:$0xff]  ;;  %v85_v27 = vld [vmem:[%s2991_s0 + $0xe8] sm:$0xff]  ;;  %v175_v28 = vpack.c.bf16 %v77_v23, %v70_v22  ;;  %v108_v48 = vld [vmem:[%s2991_s0 + $0x1a0] sm:$0xff] }
  0x3a   :  { %v2196_v26 = vld [vmem:[#allocation2 + $0x254] ss:$8 sps:$4 sm:$0xff]   ;;  %v177_v29 = vpack.c.bf16 %v79_v25, %v72_v24  ;;  %v101_v47 = vld [vmem:[%s2991_s0 + $0x168] sm:$0xff]  ;;  %v2200_v49 = vld [vmem:[#allocation2 + $0x230] ss:$8 sps:$4 sm:$0xff]  }
  0x3b   :  { %864 = vmatpush1.bf16.msra.mxu0 %v2138_v30  ;;  %v92_v30 = vld [vmem:[%s2991_s0 + $0x120] sm:$0xff]  ;;  %v192_v53 = vpack.c.bf16 %v108_v48, %v101_v47  ;;  %v98_v54 = vld [vmem:[%s2991_s0 + $0x150] sm:$0xff]  ;;  %v119_v7 = vld [vmem:[%s2991_s0 + $0x1f8] sm:$0xff] }
  0x3c   :  { %977 = vmatpush1.bf16.msra.mxu1 %v2139_v31  ;;  %865 = vmatprep.subr.bf16.mxu0 %v2140_v32  ;;  %v87_v31 = vld [vmem:[%s2991_s0 + $0xf8] sm:$0xff]  ;;  %v94_v32 = vld [vmem:[%s2991_s0 + $0x130] sm:$0xff]  ;;  %v112_v6 = vld [vmem:[%s2991_s0 + $0x1c0] sm:$0xff] }
  0x3d   :  { %978 = vmatprep.subr.bf16.mxu1 %v2142_v33  ;;  %v2194_v33 = vld [vmem:[#allocation2 + $0x250] ss:$8 sps:$4 sm:$0xff]   ;;  %v121_v9 = vld [vmem:[%s2991_s0 + $0x208] sm:$0xff]  ;;  %v196_v12 = vpack.c.bf16 %v119_v7, %v112_v6  ;;  %v136_v16 = vld [vmem:[%s2991_s0 + $0x280] sm:$0xff] }
  0x3e   :  { %v114_v8 = vld [vmem:[%s2991_s0 + $0x1d0] sm:$0xff]  ;;  %v127_v11 = vld [vmem:[%s2991_s0 + $0x238] sm:$0xff]  ;;  %v129_v15 = vld [vmem:[%s2991_s0 + $0x248] sm:$0xff] }
  0x3f   :  { %866 = vmatpush2.bf16.msra.mxu0 %v2144_v34  ;;  %v2199_v34 = vld [vmem:[#allocation2 + $0x244] ss:$8 sps:$4 sm:$0xff]   ;;  %v126_v22 = vld [vmem:[%s2991_s0 + $0x230] sm:$0xff]  ;;  %v135_v25 = vld [vmem:[%s2991_s0 + $0x278] sm:$0xff] }
  0x40   :  { %979 = vmatpush2.bf16.msra.mxu1 %v2145_v35  ;;  %867 = vmatprep.subr.bf16.mxu0 %v2146_v36  ;;  %v183_v35 = vpack.c.bf16 %v92_v30, %v85_v27  ;;  %v185_v36 = vpack.c.bf16 %v94_v32, %v87_v31  ;;  %v133_v23 = vld [vmem:[%s2991_s0 + $0x268] sm:$0xff]  ;;  %v128_v24 = vld [vmem:[%s2991_s0 + $0x240] sm:$0xff]  ;;  %v143_v30 = vld [vmem:[%s2991_s0 + $0x2b8] sm:$0xff] }
  0x41   :  { %980 = vmatprep.subr.bf16.mxu1 %v2148_v37  ;;  %v2197_v37 = vld [vmem:[#allocation2 + $0x240] ss:$8 sps:$4 sm:$0xff]   ;;  %v150_v31 = vld [vmem:[%s2991_s0 + $0x2f0] sm:$0xff]  ;;  %v203_v32 = vpack.c.bf16 %v133_v23, %v126_v22  ;;  %v67_v7 = vld [vmem:[%s2991_s0 + $0x58] sm:$0xff] }
  0x42   :  { %v141_v27 = vld [vmem:[%s2991_s0 + $0x2a8] sm:$0xff]  ;;  %v2224_v47 = vld [vmem:[#allocation2 + $0x2b0] ss:$8 sps:$4 sm:$0xff]   ;;  %v60_v6 = vld [vmem:[%s2991_s0 + $0x20] sm:$0xff] }
  0x43   :  { %868 = vmatpush2.bf16.msra.mxu0 %v2150_v38  ;;  %v84_v38 = vld [vmem:[%s2991_s0 + $0xe0] sm:$0xff]  ;;  %v158_v22 = vld [vmem:[%s2991_s0 + $0x330] sm:$0xff]  ;;  %v165_v23 = vld [vmem:[%s2991_s0 + $0x368] sm:$0xff] }
  0x44   :  { %981 = vmatpush2.bf16.msra.mxu1 %v2151_v39  ;;  %869 = vmatprep.subr.bf16.mxu0 %v2152_v40  ;;  %v91_v39 = vld [vmem:[%s2991_s0 + $0x118] sm:$0xff]  ;;  %v86_v40 = vld [vmem:[%s2991_s0 + $0xf0] sm:$0xff] }
  0x45   :  { %982 = vmatprep.subr.bf16.mxu1 %v2154_v41  ;;  %v93_v41 = vld [vmem:[%s2991_s0 + $0x128] sm:$0xff] }
  0x46   :  { %v184_v46 = vpack.c.bf16 %v93_v41, %v86_v40  ;;  %v142_v40 = vld [vmem:[%s2991_s0 + $0x2b0] sm:$0xff]  ;;  %v149_v41 = vld [vmem:[%s2991_s0 + $0x2e8] sm:$0xff] }
  0x47   :  { %870 = vmatpush2.bf16.msra.mxu0 %v2156_v42  ;;  %v2202_v42 = vld [vmem:[#allocation2 + $0x234] ss:$8 sps:$4 sm:$0xff]  }
  0x48   :  { %983 = vmatpush2.bf16.msra.mxu1 %v2157_v43  ;;  %871 = vmatprep.subr.bf16.mxu0 %v2158_v44  ;;  %v99_v43 = vld [vmem:[%s2991_s0 + $0x158] sm:$0xff]  ;;  %v106_v44 = vld [vmem:[%s2991_s0 + $0x190] sm:$0xff] }
  0x49   :  { %984 = vmatprep.subr.bf16.mxu1 %v2160_v45  ;;  %v182_v45 = vpack.c.bf16 %v91_v39, %v84_v38  ;;  %v140_v38 = vld [vmem:[%s2991_s0 + $0x2a0] sm:$0xff]  ;;  %v147_v39 = vld [vmem:[%s2991_s0 + $0x2d8] sm:$0xff] }
  0x4a   :  { %v210_v48 = vpack.c.bf16 %v147_v39, %v140_v38  ;;  %v102_v39 = vld [vmem:[%s2991_s0 + $0x170] sm:$0xff] }
  0x4b   :  { %872 = vmatpush2.bf16.msra.mxu0 %v2162_v50  ;;  %v2205_v50 = vld [vmem:[#allocation2 + $0x224] ss:$8 sps:$4 sm:$0xff]  }
  0x4c   :  { %985 = vmatpush2.bf16.msra.mxu1 %v2163_v51  ;;  %873 = vmatprep.subr.bf16.mxu0 %v2164_v52  ;;  %v2203_v51 = vld [vmem:[#allocation2 + $0x220] ss:$8 sps:$4 sm:$0xff]   ;;  %v190_v52 = vpack.c.bf16 %v106_v44, %v99_v43  ;;  %v155_v43 = vld [vmem:[%s2991_s0 + $0x318] sm:$0xff]  ;;  %v162_v44 = vld [vmem:[%s2991_s0 + $0x350] sm:$0xff] }
  0x4d   :  { %986 = vmatprep.subr.bf16.mxu1 %v2166_v55  ;;  %v105_v55 = vld [vmem:[%s2991_s0 + $0x188] sm:$0xff] }
  0x4f   :  { %874 = vmatpush2.bf16.msra.mxu0 %v2168_v56  ;;  %v100_v56 = vld [vmem:[%s2991_s0 + $0x160] sm:$0xff] }
  0x50   :  { %987 = vmatpush2.bf16.msra.mxu1 %v2169_v57  ;;  %875 = vmatprep.subr.bf16.mxu0 %v2170_v58  ;;  %v107_v57 = vld [vmem:[%s2991_s0 + $0x198] sm:$0xff] }
  0x51   :  { %988 = vmatprep.subr.bf16.mxu1 %v2172_v59  ;;  %v2208_v58 = vld [vmem:[#allocation2 + $0x214] ss:$8 sps:$4 sm:$0xff]   ;;  %v113_v59 = vld [vmem:[%s2991_s0 + $0x1c8] sm:$0xff] }
  0x53   :  { %876 = vmatpush2.bf16.msra.mxu0 %v2174_v60  ;;  %v189_v60 = vpack.c.bf16 %v105_v55, %v98_v54  ;;  %v154_v54 = vld [vmem:[%s2991_s0 + $0x310] sm:$0xff]  ;;  %v161_v55 = vld [vmem:[%s2991_s0 + $0x348] sm:$0xff] }
  0x54   :  { %989 = vmatpush2.bf16.msra.mxu1 %v2175_v61  ;;  %877 = vmatprep.subr.bf16.mxu0 %v2176_v62  ;;  %v191_v61 = vpack.c.bf16 %v107_v57, %v100_v56  ;;  %v120_v62 = vld [vmem:[%s2991_s0 + $0x200] sm:$0xff]  ;;  %v163_v57 = vld [vmem:[%s2991_s0 + $0x358] sm:$0xff] }
  0x55   :  { %990 = vmatprep.subr.bf16.mxu1 %v2178_v63  ;;  %v115_v63 = vld [vmem:[%s2991_s0 + $0x1d8] sm:$0xff]  ;;  %v156_v56 = vld [vmem:[%s2991_s0 + $0x320] sm:$0xff] }
  0x57   :  { %878 = vmatpush2.bf16.msra.mxu0 %v2180_v0  ;;  %v122_v0 = vld [vmem:[%s2991_s0 + $0x210] sm:$0xff] }
  0x58   :  { %991 = vmatpush2.bf16.msra.mxu1 %v2181_v1  ;;  %879 = vmatprep.subr.bf16.mxu0 %v2182_v2  ;;  %v2206_v1 = vld [vmem:[#allocation2 + $0x210] ss:$8 sps:$4 sm:$0xff]   ;;  %v2211_v2 = vld [vmem:[#allocation2 + $0x204] ss:$8 sps:$4 sm:$0xff]  }
  0x59   :  { %992 = vmatprep.subr.bf16.mxu1 %v2184_v3  ;;  %v197_v3 = vpack.c.bf16 %v120_v62, %v113_v59  ;;  %v61_v59 = vld [vmem:[%s2991_s0 + $0x28] sm:$0xff]  ;;  %v68_v62 = vld [vmem:[%s2991_s0 + $0x60] sm:$0xff] }
  0x5b   :  { %880 = vmatpush2.bf16.msra.mxu0 %v2186_v4  ;;  %v199_v4 = vpack.c.bf16 %v122_v0, %v115_v63  ;;  %v145_v63 = vld [vmem:[%s2991_s0 + $0x2c8] sm:$0xff]  ;;  %v152_v0 = vld [vmem:[%s2991_s0 + $0x300] sm:$0xff] }
  0x5c   :  { %993 = vmatpush2.bf16.msra.mxu1 %v2187_v5  ;;  %1075 = vmatprep.subr.bf16.mxu0 %v2190_v10  ;;  %v2209_v5 = vld [vmem:[#allocation2 + $0x200] ss:$8 sps:$4 sm:$0xff]  }
  0x5d   :  { %2052 = vmatprep.subr.bf16.mxu1 %v2190_v10  ;;  %v2214_v10 = vld [vmem:[#allocation2 + $0x2f4] ss:$8 sps:$4 sm:$0xff]  }
  0x5e   :  { %882 = vmatmul.mubr.bf16.vlgmr.msra.gmra.mxu0 %v168_v13  ;;  %v198_v13 = vpack.c.bf16 %v121_v9, %v114_v8  ;;  %v144_v8 = vld [vmem:[%s2991_s0 + $0x2c0] sm:$0xff]  ;;  %v151_v9 = vld [vmem:[%s2991_s0 + $0x2f8] sm:$0xff] }
  0x5f   :  { %995 = vmatmul.mubr.bf16.vlgmr.msra.gmra.mxu1 %v170_v14  ;;  %1076 = vmatpush1.bf16.msra.mxu0 %v2188_v17  ;;  %v134_v14 = vld [vmem:[%s2991_s0 + $0x270] sm:$0xff] }
  0x60   :  { %2068 = vmatpush1.bf16.msra.mxu1 %v2188_v17  ;;  %1077 = vmatprep.subr.bf16.mxu0 %v2193_v18  ;;  %v2212_v17 = vld [vmem:[#allocation2 + $0x2f0] ss:$8 sps:$4 sm:$0xff]  }
  0x61   :  { %2053 = vmatprep.subr.bf16.mxu1 %v2193_v18  ;;  %891 = vmatprep.mubr.bf16.mxu0 %v176_v20  ;;  %v2217_v18 = vld [vmem:[#allocation2 + $0x2e4] ss:$8 sps:$4 sm:$0xff]   ;;  %v206_v20 = vpack.c.bf16 %v136_v16, %v129_v15  ;;  %v172_v15 = vpack.c.bf16 %v67_v7, %v60_v6  ;;  %v214_v16 = vpack.c.bf16 %v151_v9, %v144_v8  ;;  %v146_v9 = vld [vmem:[%s2991_s0 + $0x2d0] sm:$0xff] }
  0x62   :  { %1004 = vmatprep.mubr.bf16.mxu1 %v178_v21  ;;  %v2215_v21 = vld [vmem:[#allocation2 + $0x2e0] ss:$8 sps:$4 sm:$0xff]  }
  0x63   :  { %1078 = vmatpush1.bf16.msra.mxu0 %v2191_v19  ;;  %v2241_v7 = vld [vmem:[#allocation5 + $0x70] sm:$0xff]  }
  0x64   :  { %2069 = vmatpush1.bf16.msra.mxu1 %v2191_v19  ;;  %1079 = vmatprep.subr.bf16.mxu0 %v2196_v26  ;;  %v204_v19 = vpack.c.bf16 %v134_v14, %v127_v11  ;;  %v75_v11 = vld [vmem:[%s2991_s0 + $0x98] sm:$0xff]  ;;  %v166_v14 = vld [vmem:[%s2991_s0 + $0x370] sm:$0xff]  ;;  %v2242_v8 = vld [vmem:[#allocation5 + $0x30] sm:$0xff]  }
  0x65   :  { %2054 = vmatprep.subr.bf16.mxu1 %v2196_v26  ;;  %v2220_v26 = vld [vmem:[#allocation2 + $0x2d4] ss:$8 sps:$4 sm:$0xff]  }
  0x66   :  { %892 = vmatmul.mubr.bf16.gmra.mxu0 %v175_v28  ;;  %v2218_v28 = vld [vmem:[#allocation2 + $0x2d0] ss:$8 sps:$4 sm:$0xff]  }
  0x67   :  { %1005 = vmatmul.mubr.bf16.gmra.mxu1 %v177_v29  ;;  %1080 = vmatpush1.bf16.msra.mxu0 %v2194_v33  ;;  %v148_v29 = vld [vmem:[%s2991_s0 + $0x2e0] sm:$0xff] }
  0x68   :  { %2070 = vmatpush1.bf16.msra.mxu1 %v2194_v33  ;;  %1081 = vmatprep.subr.bf16.mxu0 %v2199_v34  ;;  %v205_v33 = vpack.c.bf16 %v135_v25, %v128_v24  ;;  %v89_v24 = vld [vmem:[%s2991_s0 + $0x108] sm:$0xff]  ;;  %v96_v25 = vld [vmem:[%s2991_s0 + $0x140] sm:$0xff] }
  0x69   :  { %2055 = vmatprep.subr.bf16.mxu1 %v2199_v34  ;;  %901 = vmatprep.mubr.bf16.mxu0 %v183_v35  ;;  %v2223_v34 = vld [vmem:[#allocation2 + $0x2c4] ss:$8 sps:$4 sm:$0xff]   ;;  %v2221_v35 = vld [vmem:[#allocation2 + $0x2c0] ss:$8 sps:$4 sm:$0xff]  }
  0x6a   :  { %1014 = vmatprep.mubr.bf16.mxu1 %v185_v36  ;;  %v211_v36 = vpack.c.bf16 %v148_v29, %v141_v27  ;;  %v221_v27 = vpack.c.bf16 %v165_v23, %v158_v22  ;;  %v88_v29 = vld [vmem:[%s2991_s0 + $0x100] sm:$0xff]  ;;  %v2251_v23 = vld [vmem:[#allocation5 + $0x48] sm:$0xff]  }
  0x6b   :  { %1082 = vmatpush1.bf16.msra.mxu0 %v2197_v37  ;;  %v2250_v22 = vld [vmem:[#allocation5 + $0x10] sm:$0xff]  }
  0x6c   :  { %2071 = vmatpush1.bf16.msra.mxu1 %v2197_v37  ;;  %1083 = vmatprep.subr.bf16.mxu0 %v2202_v42  ;;  %v213_v37 = vpack.c.bf16 %v150_v31, %v143_v30  ;;  %v2335_v30 = vmov 0   ;;  %v95_v31 = vld [vmem:[%s2991_s0 + $0x138] sm:$0xff] }
  0x6d   :  { %2056 = vmatprep.subr.bf16.mxu1 %v2202_v42  ;;  %v2226_v42 = vld [vmem:[#allocation2 + $0x2b4] ss:$8 sps:$4 sm:$0xff]  }
  0x6e   :  { %902 = vmatmul.mubr.bf16.gmra.mxu0 %v182_v45  ;;  %v157_v45 = vld [vmem:[%s2991_s0 + $0x328] sm:$0xff] }
  0x6f   :  { %1015 = vmatmul.mubr.bf16.gmra.mxu1 %v184_v46  ;;  %1084 = vmatpush1.bf16.msra.mxu0 %v2200_v49  ;;  %v164_v46 = vld [vmem:[%s2991_s0 + $0x360] sm:$0xff] }
  0x70   :  { %2072 = vmatpush1.bf16.msra.mxu1 %v2200_v49  ;;  %1085 = vmatprep.subr.bf16.mxu0 %v2205_v50  ;;  %v212_v49 = vpack.c.bf16 %v149_v41, %v142_v40  ;;  %v109_v40 = vld [vmem:[%s2991_s0 + $0x1a8] sm:$0xff]  ;;  %v76_v41 = vld [vmem:[%s2991_s0 + $0xa0] sm:$0xff] }
  0x71   :  { %2057 = vmatprep.subr.bf16.mxu1 %v2205_v50  ;;  %911 = vmatprep.mubr.bf16.mxu0 %v190_v52  ;;  %v2229_v50 = vld [vmem:[#allocation2 + $0x2a4] ss:$8 sps:$4 sm:$0xff]   ;;  %v218_v52 = vpack.c.bf16 %v162_v44, %v155_v43 }
  0x72   :  { %1024 = vmatprep.mubr.bf16.mxu1 %v192_v53  ;;  %v220_v53 = vpack.c.bf16 %v164_v46, %v157_v45  ;;  %v117_v43 = vld [vmem:[%s2991_s0 + $0x1e8] sm:$0xff]  ;;  %v124_v44 = vld [vmem:[%s2991_s0 + $0x220] sm:$0xff]  ;;  %v193_v45 = vpack.c.bf16 %v109_v40, %v102_v39 }
  0x73   :  { %1086 = vmatpush1.bf16.msra.mxu0 %v2203_v51 }
  0x74   :  { %2073 = vmatpush1.bf16.msra.mxu1 %v2203_v51  ;;  %1087 = vmatprep.subr.bf16.mxu0 %v2208_v58  ;;  %v2227_v51 = vld [vmem:[#allocation2 + $0x2a0] ss:$8 sps:$4 sm:$0xff]  }
  0x75   :  { %2058 = vmatprep.subr.bf16.mxu1 %v2208_v58  ;;  %v2232_v58 = vld [vmem:[#allocation2 + $0x294] ss:$8 sps:$4 sm:$0xff]  }
  0x76   :  { %912 = vmatmul.mubr.bf16.gmra.mxu0 %v189_v60  ;;  %v217_v60 = vpack.c.bf16 %v161_v55, %v154_v54 }
  0x77   :  { %1025 = vmatmul.mubr.bf16.gmra.mxu1 %v191_v61  ;;  %1088 = vmatpush1.bf16.msra.mxu0 %v2206_v1  ;;  %v219_v61 = vpack.c.bf16 %v163_v57, %v156_v56  ;;  %v130_v57 = vld [vmem:[%s2991_s0 + $0x250] sm:$0xff] }
  0x78   :  { %2074 = vmatpush1.bf16.msra.mxu1 %v2206_v1  ;;  %1089 = vmatprep.subr.bf16.mxu0 %v2211_v2  ;;  %v2230_v1 = vld [vmem:[#allocation2 + $0x290] ss:$8 sps:$4 sm:$0xff]  }
  0x79   :  { %2059 = vmatprep.subr.bf16.mxu1 %v2211_v2  ;;  %921 = vmatprep.mubr.bf16.mxu0 %v197_v3  ;;  %v2235_v2 = vld [vmem:[#allocation2 + $0x284] ss:$8 sps:$4 sm:$0xff]   ;;  %v173_v3 = vpack.c.bf16 %v68_v62, %v61_v59 }
  0x7a   :  { %1034 = vmatprep.mubr.bf16.mxu1 %v199_v4  ;;  %v215_v4 = vpack.c.bf16 %v152_v0, %v145_v63  ;;  %v104_v59 = vld [vmem:[%s2991_s0 + $0x180] sm:$0xff]  ;;  %v118_v63 = vld [vmem:[%s2991_s0 + $0x1f0] sm:$0xff]  ;;  %v125_v0 = vld [vmem:[%s2991_s0 + $0x228] sm:$0xff] }
  0x7b   :  { %1090 = vmatpush1.bf16.msra.mxu0 %v2209_v5 }
  0x7c   :  { %2075 = vmatpush1.bf16.msra.mxu1 %v2209_v5  ;;  %1091 = vmatprep.subr.bf16.mxu0 %v2214_v10  ;;  %v2233_v5 = vld [vmem:[#allocation2 + $0x280] ss:$8 sps:$4 sm:$0xff]  }
  0x7d   :  { %2060 = vmatprep.subr.bf16.mxu1 %v2214_v10  ;;  %v2238_v10 = vld [vmem:[#allocation2 + $0x304] ss:$8 sps:$4 sm:$0xff]  }
  0x7e   :  { %922 = vmatmul.mubr.bf16.gmra.mxu0 %v196_v12  ;;  %v82_v12 = vld [vmem:[%s2991_s0 + $0xd0] sm:$0xff] }
  0x7f   :  { %1035 = vmatmul.mubr.bf16.gmra.mxu1 %v198_v13  ;;  %1092 = vmatpush2.bf16.msra.mxu0 %v2212_v17  ;;  %v159_v13 = vld [vmem:[%s2991_s0 + $0x338] sm:$0xff] }
  0x80   :  { %2076 = vmatpush2.bf16.msra.mxu1 %v2212_v17  ;;  %1093 = vmatprep.subr.bf16.mxu0 %v2217_v18  ;;  %v2236_v17 = vld [vmem:[#allocation2 + $0x300] ss:$8 sps:$4 sm:$0xff]  }
  0x81   :  { %2061 = vmatprep.subr.bf16.mxu1 %v2217_v18  ;;  %931 = vmatprep.mubr.bf16.mxu0 %v204_v19  ;;  %v180_v18 = vpack.c.bf16 %v82_v12, %v75_v11  ;;  %v222_v19 = vpack.c.bf16 %v166_v14, %v159_v13  ;;  %v2243_v12 = vld [vmem:[#allocation5 + $0x68] sm:$0xff]   ;;  %v160_v14 = vld [vmem:[%s2991_s0 + $0x340] sm:$0xff] }
  0x82   :  { %1044 = vmatprep.mubr.bf16.mxu1 %v206_v20  ;;  %v74_v20 = vld [vmem:[%s2991_s0 + $0x90] sm:$0xff]  ;;  %v2244_v13 = vld [vmem:[#allocation5 + $0x28] sm:$0xff]  }
  0x83   :  { %1094 = vmatpush2.bf16.msra.mxu0 %v2215_v21 }
  0x84   :  { %2077 = vmatpush2.bf16.msra.mxu1 %v2215_v21  ;;  %1095 = vmatprep.subr.bf16.mxu0 %v2220_v26  ;;  %v81_v21 = vld [vmem:[%s2991_s0 + $0xc8] sm:$0xff] }
  0x85   :  { %2062 = vmatprep.subr.bf16.mxu1 %v2220_v26  ;;  %v179_v26 = vpack.c.bf16 %v81_v21, %v74_v20  ;;  %v2248_v20 = vld [vmem:[#allocation5 + $0x18] sm:$0xff]   ;;  %v2249_v21 = vld [vmem:[#allocation5 + $0x50] sm:$0xff]  }
  0x86   :  { %932 = vmatmul.mubr.bf16.gmra.mxu0 %v203_v32  ;;  %v62_v32 = vld [vmem:[%s2991_s0 + $0x30] sm:$0xff] }
  0x87   :  { %1045 = vmatmul.mubr.bf16.gmra.mxu1 %v205_v33  ;;  %1096 = vmatpush2.bf16.msra.mxu0 %v2218_v28  ;;  %v69_v33 = vld [vmem:[%s2991_s0 + $0x68] sm:$0xff] }
  0x88   :  { %2078 = vmatpush2.bf16.msra.mxu1 %v2218_v28  ;;  %1097 = vmatprep.subr.bf16.mxu0 %v2223_v34  ;;  %v187_v28 = vpack.c.bf16 %v96_v25, %v89_v24  ;;  %v2252_v24 = vld [vmem:[#allocation5 + $0x8] sm:$0xff]   ;;  %v2253_v25 = vld [vmem:[#allocation5 + $0x40] sm:$0xff]  }
  0x89   :  { %2063 = vmatprep.subr.bf16.mxu1 %v2223_v34  ;;  %941 = vmatprep.mubr.bf16.mxu0 %v211_v36  ;;  %v103_v34 = vld [vmem:[%s2991_s0 + $0x178] sm:$0xff]  ;;  %v186_v36 = vpack.c.bf16 %v95_v31, %v88_v29 }
  0x8a   :  { %1054 = vmatprep.mubr.bf16.mxu1 %v213_v37  ;;  %v174_v37 = vpack.c.bf16 %v69_v33, %v62_v32 }
  0x8b   :  { %1098 = vmatpush2.bf16.msra.mxu0 %v2221_v35 }
  0x8c   :  { %2079 = vmatpush2.bf16.msra.mxu1 %v2221_v35  ;;  %1099 = vmatprep.subr.bf16.mxu0 %v2226_v42  ;;  %v110_v35 = vld [vmem:[%s2991_s0 + $0x1b0] sm:$0xff] }
  0x8d   :  { %2064 = vmatprep.subr.bf16.mxu1 %v2226_v42  ;;  %v194_v38 = vpack.c.bf16 %v110_v35, %v103_v34  ;;  %v83_v42 = vld [vmem:[%s2991_s0 + $0xd8] sm:$0xff] }
  0x8e   :  { %942 = vmatmul.mubr.bf16.gmra.mxu0 %v210_v48  ;;  %v181_v46 = vpack.c.bf16 %v83_v42, %v76_v41  ;;  %v116_v48 = vld [vmem:[%s2991_s0 + $0x1e0] sm:$0xff] }
  0x8f   :  { %1055 = vmatmul.mubr.bf16.gmra.mxu1 %v212_v49  ;;  %1100 = vmatpush2.bf16.msra.mxu0 %v2224_v47  ;;  %v123_v49 = vld [vmem:[%s2991_s0 + $0x218] sm:$0xff] }
  0x90   :  { %2080 = vmatpush2.bf16.msra.mxu1 %v2224_v47  ;;  %1101 = vmatprep.subr.bf16.mxu0 %v2229_v50  ;;  %v201_v47 = vpack.c.bf16 %v124_v44, %v117_v43  ;;  %v200_v54 = vpack.c.bf16 %v123_v49, %v116_v48 }
  0x91   :  { %2065 = vmatprep.subr.bf16.mxu1 %v2229_v50  ;;  %951 = vmatprep.mubr.bf16.mxu0 %v218_v52  ;;  %v90_v50 = vld [vmem:[%s2991_s0 + $0x110] sm:$0xff]  ;;  %v131_v52 = vld [vmem:[%s2991_s0 + $0x258] sm:$0xff] }
  0x92   :  { %1064 = vmatprep.mubr.bf16.mxu1 %v220_v53  ;;  %v138_v53 = vld [vmem:[%s2991_s0 + $0x290] sm:$0xff] }
  0x93   :  { %1102 = vmatpush2.bf16.msra.mxu0 %v2227_v51  ;;  %v208_v56 = vpack.c.bf16 %v138_v53, %v131_v52 }
  0x94   :  { %2081 = vmatpush2.bf16.msra.mxu1 %v2227_v51  ;;  %1103 = vmatprep.subr.bf16.mxu0 %v2232_v58  ;;  %v97_v51 = vld [vmem:[%s2991_s0 + $0x148] sm:$0xff] }
  0x95   :  { %2066 = vmatprep.subr.bf16.mxu1 %v2232_v58  ;;  %v188_v55 = vpack.c.bf16 %v97_v51, %v90_v50  ;;  %v137_v58 = vld [vmem:[%s2991_s0 + $0x288] sm:$0xff] }
  0x96   :  { %952 = vmatmul.mubr.bf16.gmra.mxu0 %v217_v60  ;;  %v111_v60 = vld [vmem:[%s2991_s0 + $0x1b8] sm:$0xff] }
  0x97   :  { %1065 = vmatmul.mubr.bf16.gmra.mxu1 %v219_v61  ;;  %1104 = vmatpush2.bf16.msra.mxu0 %v2230_v1  ;;  %v207_v61 = vpack.c.bf16 %v137_v58, %v130_v57  ;;  %v195_v62 = vpack.c.bf16 %v111_v60, %v104_v59 }
  0x98   :  { %2082 = vmatpush2.bf16.msra.mxu1 %v2230_v1  ;;  %1105 = vmatprep.subr.bf16.mxu0 %v2235_v2  ;;  %v202_v1 = vpack.c.bf16 %v125_v0, %v118_v63 }
  0x99   :  { %2067 = vmatprep.subr.bf16.mxu1 %v2235_v2  ;;  %1107 = vmatprep.mubr.bf16.mxu0 %v173_v3  ;;  %v132_v2 = vld [vmem:[%s2991_s0 + $0x260] sm:$0xff]  ;;  %v139_v3 = vld [vmem:[%s2991_s0 + $0x298] sm:$0xff] }
  0x9a   :  { %1167 = vmatprep.mubr.bf16.mxu1 %v215_v4  ;;  %v2239_v4 = vld [vmem:[#allocation5 + $0x78] sm:$0xff]   ;;  %v209_v6 = vpack.c.bf16 %v139_v3, %v132_v2 }
  0x9b   :  { %1106 = vmatpush2.bf16.msra.mxu0 %v2233_v5 }
  0x9c   :  { %2083 = vmatpush2.bf16.msra.mxu1 %v2233_v5  ;;  %v2240_v5 = vld [vmem:[#allocation5 + $0x38] sm:$0xff]   ;;  %1940 = vmatprep.subr.bf16.mxu0 %v2239_v4 }
  0x9d   :  { %1202 = vmatprep.subr.bf16.mxu1 %v2238_v10  ;;  %v153_v10 = vld [vmem:[%s2991_s0 + $0x308] sm:$0xff] }
  0x9e   :  { %1108 = vmatmul.mubr.bf16.vlgmr.msra.gmra.mxu0 %v172_v15  ;;  %v216_v11 = vpack.c.bf16 %v153_v10, %v146_v9  ;;  %v167_v15 = vld [vmem:[%s2991_s0 + $0x378] sm:$0xff] }
  0x9f   :  { %1168 = vmatmul.mubr.bf16.vlgmr.msra.gmra.mxu1 %v214_v16  ;;  %1117 = vmatprep.mubr.bf16.mxu0 %v180_v18  ;;  %v2245_v16 = vld [vmem:[#allocation5 + $0x60] sm:$0xff]   ;;  %v223_v18 = vpack.c.bf16 %v167_v15, %v160_v14 }
  0xa0   :  { %1203 = vmatpush1.bf16.msra.mxu1 %v2236_v17  ;;  %1177 = vmatprep.mubr.bf16.mxu1 %v222_v19  ;;  %v2246_v17 = vld [vmem:[#allocation5 + $0x20] sm:$0xff]   ;;  %v2247_v19 = vld [vmem:[#allocation5 + $0x58] sm:$0xff]  }
  0xa1   :  { %1941 = vmatpush3.bf16.msra.mxu0 %v2240_v5 }
  0xa2   :  { %1942 = vmatprep.subr.bf16.mxu0 %v2241_v7  ;;  %v2256_v7 = vld [vmem:[%s2996_s5 + $0x30] sm:$0xff]  }
  0xa5   :  { %1943 = vmatpush3.bf16.msra.mxu0 %v2242_v8 }
  0xa6   :  { %1118 = vmatmul.mubr.bf16.gmra.mxu0 %v179_v26  ;;  %1944 = vmatprep.subr.bf16.mxu0 %v2243_v12  ;;  %v2254_v26 = vld [vmem:[#allocation5] sm:$0xff]  }
  0xa7   :  { %1178 = vmatmul.mubr.bf16.gmra.mxu1 %v221_v27  ;;  %1127 = vmatprep.mubr.bf16.mxu0 %v187_v28  ;;  %v324_v27 = vlaneseq }
  0xa8   :  { %1220 = vmatprep.mubr.bf16.mxu1 %v2335_v30 }
  0xa9   :  { %1945 = vmatpush3.bf16.msra.mxu0 %v2244_v13  ;;  %v325_v28 = vshrl.u32 %v324_v27, 7  ;;  %v2257_v13 = vld [vmem:[%s2996_s5 + $0x28] sm:$0xff]  }
  0xaa   :  { %1946 = vmatprep.subr.bf16.mxu0 %v2245_v16 }
  0xab   :  { %v326_v29 = vsub.s32 0, %v325_v28  ;;  %v330_v31 = vsub.s32 1, %v325_v28 }
  0xad   :  { %1947 = vmatpush3.bf16.msra.mxu0 %v2246_v17 }
  0xae   :  { %1128 = vmatmul.mubr.bf16.gmra.mxu0 %v186_v36  ;;  %1948 = vmatprep.subr.bf16.mxu0 %v2247_v19 }
  0xaf   :  { %1906 = vmatmul.mubr.msk.bf16.vlgmr.msra.gmra.mxu1 %vm824_vm0, %v174_v37  ;;  %1137 = vmatprep.mubr.bf16.mxu0 %v194_v38 }
  0xb0   :  { %1230 = vmatprep.mubr.bf16.mxu1 %v2335_v30 }
  0xb1   :  { %1949 = vmatpush3.bf16.msra.mxu0 %v2248_v20 }
  0xb2   :  { %1950 = vmatprep.subr.bf16.mxu0 %v2249_v21 }
  0xb5   :  { %1951 = vmatpush3.bf16.msra.mxu0 %v2250_v22 }
  0xb6   :  { %1138 = vmatmul.mubr.bf16.gmra.mxu0 %v193_v45  ;;  %1952 = vmatprep.subr.bf16.mxu0 %v2251_v23 }
  0xb7   :  { %1907 = vmatmul.mubr.msk.bf16.gmra.mxu1 %vm824_vm0, %v181_v46  ;;  %1147 = vmatprep.mubr.bf16.mxu0 %v201_v47 }
  0xb8   :  { %1240 = vmatprep.mubr.bf16.mxu1 %v2335_v30 }
  0xb9   :  { %1953 = vmatpush3.bf16.msra.mxu0 %v2252_v24 }
  0xba   :  { %1954 = vmatprep.subr.bf16.mxu0 %v2253_v25 }
  0xbd   :  { %1955 = vmatpush3.bf16.msra.mxu0 %v2254_v26 }
  0xbe   :  { %1148 = vmatmul.mubr.bf16.gmra.mxu0 %v200_v54 }
  0xbf   :  { %1908 = vmatmul.mubr.msk.bf16.gmra.mxu1 %vm824_vm0, %v188_v55  ;;  %1157 = vmatprep.mubr.bf16.mxu0 %v208_v56 }
  0xc0   :  { %1250 = vmatprep.mubr.bf16.mxu1 %v2335_v30 }
  0xc6   :  { %1158 = vmatmul.mubr.bf16.gmra.mxu0 %v207_v61 }
  0xc7   :  { %1909 = vmatmul.mubr.msk.bf16.gmra.mxu1 %vm824_vm0, %v195_v62 }
  0xc8   :  { %1260 = vmatprep.mubr.bf16.mxu1 %v2335_v30 }
  0xcf   :  { %1910 = vmatmul.mubr.msk.bf16.gmra.mxu1 %vm824_vm0, %v202_v1 }
  0xd0   :  { %1270 = vmatprep.mubr.bf16.mxu1 %v2335_v30 }
  0xd7   :  { %1911 = vmatmul.mubr.msk.bf16.gmra.mxu1 %vm824_vm0, %v209_v6  ;;  %v2255_v6 = vld [vmem:[%s2996_s5 + $0x38] sm:$0xff]  }
  0xd8   :  { %1280 = vmatprep.mubr.bf16.mxu1 %v2335_v30  ;;  %2020 = vmatprep.subr.bf16.mxu1 %v2255_v6 }
  0xd9   :  { %2021 = vmatpush3.bf16.msra.mxu1 %v2255_v6 }
  0xda   :  { %2022 = vmatprep.subr.bf16.mxu1 %v2256_v7 }
  0xdd   :  { %2023 = vmatpush3.bf16.msra.mxu1 %v2256_v7 }
  0xde   :  { %2024 = vmatprep.subr.bf16.mxu1 %v2257_v13 }
  0xdf   :  { %1912 = vmatmul.mubr.msk.bf16.gmra.mxu1 %vm824_vm0, %v216_v11 }
  0xe0   :  { %1290 = vmatprep.mubr.bf16.mxu1 %v2335_v30  ;;  %v322_v30 = vld [vmem:[%s2993_s2] sm:$0x3] }
  0xe1   :  { %v2741_v32 = vrot.slane %v322_v30, %v326_v29  ;;  %v2743_v33 = vrot.slane %v322_v30, %v330_v31  ;;  %2025 = vmatpush3.bf16.msra.mxu1 %v2257_v13 }
  0xe7   :  { %1913 = vmatmul.mubr.msk.bf16.gmra.mxu1 %vm824_vm0, %v223_v18 }
 0x11e   :  { %v883_v34 = vpop.f32.mrf.mxu0 }
 0x11f   :  { %v996_v35 = vpop.f32.mrf.mxu1  ;;  %v884_v36 = vadd.f32 %v883_v34, %v2741_v32 }
 0x120   :  { %v885_v37 = vpop.f32.mrf.mxu0 }
 0x121   :  { %v998_v38 = vpop.f32.mrf.mxu1  ;;  %v2746_v39 = vadd.f32 %v996_v35, %v884_v36  ;;  %v886_v40 = vadd.f32 %v885_v37, %v2743_v33 }
 0x122   :  { %v2749_v41 = vpop.f32.mrf.mxu0 }
 0x123   :  { %v2751_v42 = vpop.f32.mrf.mxu1  ;;  %v2753_v43 = vadd.f32 %v998_v38, %v886_v40 }
 0x124   :  { %v2755_v44 = vpop.f32.mrf.mxu0 }
 0x125   :  { %v2757_v45 = vpop.f32.mrf.mxu1 }
 0x126   :  { %v893_v46 = vpop.f32.mrf.mxu0 }
 0x127   :  { %v1006_v47 = vpop.f32.mrf.mxu1  ;;  %v894_v48 = vadd.f32 %v893_v46, %v2741_v32 }
 0x128   :  { %v895_v49 = vpop.f32.mrf.mxu0 }
 0x129   :  { %v1008_v50 = vpop.f32.mrf.mxu1  ;;  %v2760_v51 = vadd.f32 %v1006_v47, %v894_v48  ;;  %v896_v52 = vadd.f32 %v895_v49, %v2743_v33 }
 0x12a   :  { %v2763_v53 = vpop.f32.mrf.mxu0 }
 0x12b   :  { %v2765_v54 = vpop.f32.mrf.mxu1  ;;  %v2767_v55 = vadd.f32 %v1008_v50, %v896_v52 }
 0x12c   :  { %v2769_v56 = vpop.f32.mrf.mxu0 }
 0x12d   :  { %v2771_v57 = vpop.f32.mrf.mxu1 }
 0x12e   :  { %v903_v58 = vpop.f32.mrf.mxu0 }
 0x12f   :  { %v1016_v59 = vpop.f32.mrf.mxu1  ;;  %v904_v60 = vadd.f32 %v903_v58, %v2741_v32 }
 0x130   :  { %v905_v61 = vpop.f32.mrf.mxu0 }
 0x131   :  { %v1018_v62 = vpop.f32.mrf.mxu1  ;;  %v2774_v63 = vadd.f32 %v1016_v59, %v904_v60  ;;  %v906_v0 = vadd.f32 %v905_v61, %v2743_v33 }
 0x132   :  { %v2777_v1 = vpop.f32.mrf.mxu0 }
 0x133   :  { %v2779_v2 = vpop.f32.mrf.mxu1  ;;  %v2781_v3 = vadd.f32 %v1018_v62, %v906_v0 }
 0x134   :  { %v2783_v4 = vpop.f32.mrf.mxu0 }
 0x135   :  { %v2785_v5 = vpop.f32.mrf.mxu1 }
 0x136   :  { %v913_v8 = vpop.f32.mrf.mxu0 }
 0x137   :  { %v1026_v9 = vpop.f32.mrf.mxu1  ;;  %v914_v10 = vadd.f32 %v913_v8, %v2741_v32 }
 0x138   :  { %v915_v11 = vpop.f32.mrf.mxu0 }
 0x139   :  { %v1028_v12 = vpop.f32.mrf.mxu1  ;;  %v2797_v14 = vadd.f32 %v1026_v9, %v914_v10  ;;  %v916_v15 = vadd.f32 %v915_v11, %v2743_v33 }
 0x13a   :  { %v2800_v16 = vpop.f32.mrf.mxu0 }
 0x13b   :  { %v2802_v17 = vpop.f32.mrf.mxu1  ;;  %v2804_v18 = vadd.f32 %v1028_v12, %v916_v15 }
 0x13c   :  { %v2806_v19 = vpop.f32.mrf.mxu0 }
 0x13d   :  { %v2808_v20 = vpop.f32.mrf.mxu1 }
 0x13e   :  { %v923_v21 = vpop.f32.mrf.mxu0 }
 0x13f   :  { %v1036_v22 = vpop.f32.mrf.mxu1  ;;  %v924_v23 = vadd.f32 %v923_v21, %v2741_v32 }
 0x140   :  { %v925_v24 = vpop.f32.mrf.mxu0 }
 0x141   :  { %v1038_v25 = vpop.f32.mrf.mxu1  ;;  %v2811_v26 = vadd.f32 %v1036_v22, %v924_v23  ;;  %v926_v27 = vadd.f32 %v925_v24, %v2743_v33 }
 0x142   :  { %v2814_v28 = vpop.f32.mrf.mxu0 }
 0x143   :  { %v2816_v29 = vpop.f32.mrf.mxu1  ;;  %v2818_v30 = vadd.f32 %v1038_v25, %v926_v27 }
 0x144   :  { %v2820_v31 = vpop.f32.mrf.mxu0 }
 0x145   :  { %v2822_v34 = vpop.f32.mrf.mxu1 }
 0x146   :  { %v933_v35 = vpop.f32.mrf.mxu0 }
 0x147   :  { %v1046_v36 = vpop.f32.mrf.mxu1  ;;  %v934_v37 = vadd.f32 %v933_v35, %v2741_v32 }
 0x148   :  { %v935_v38 = vpop.f32.mrf.mxu0 }
 0x149   :  { %v1048_v40 = vpop.f32.mrf.mxu1  ;;  %v2825_v46 = vadd.f32 %v1046_v36, %v934_v37  ;;  %v936_v47 = vadd.f32 %v935_v38, %v2743_v33 }
 0x14a   :  { %v2828_v48 = vpop.f32.mrf.mxu0 }
 0x14b   :  { %v2830_v49 = vpop.f32.mrf.mxu1  ;;  %v2832_v50 = vadd.f32 %v1048_v40, %v936_v47 }
 0x14c   :  { %v2834_v52 = vpop.f32.mrf.mxu0 }
 0x14d   :  { %v2836_v58 = vpop.f32.mrf.mxu1 }
 0x14e   :  { %v943_v59 = vpop.f32.mrf.mxu0 }
 0x14f   :  { %v1056_v60 = vpop.f32.mrf.mxu1  ;;  %v944_v61 = vadd.f32 %v943_v59, %v2741_v32 }
 0x150   :  { %v945_v62 = vpop.f32.mrf.mxu0 }
 0x151   :  { %v1058_v0 = vpop.f32.mrf.mxu1  ;;  %v1057_v6 = vadd.f32 %v1056_v60, %v944_v61  ;;  %v946_v7 = vadd.f32 %v945_v62, %v2743_v33 }
 0x152   :  { %v947_v8 = vpop.f32.mrf.mxu0 }
 0x153   :  { %v1060_v9 = vpop.f32.mrf.mxu1  ;;  %v1059_v10 = vadd.f32 %v1058_v0, %v946_v7  ;;  %v948_v40 = vadd.f32 %v947_v8, %v2741_v32 }
 0x154   :  { %v2840_v11 = vpop.f32.mrf.mxu0 }
 0x155   :  { %v2842_v12 = vpop.f32.mrf.mxu1  ;;  %v1061_v0 = vadd.f32 %v1060_v9, %v948_v40  ;;  %v888_v40 = vadd.f32 %v2749_v41, %v2741_v32 }
 0x156   :  { %2999 = vst [vmem:[#allocation11_spill] sm:$0xff] %v2842_v12  ;;  %v953_v13 = vpop.f32.mrf.mxu0 }
 0x157   :  { %v1066_v15 = vpop.f32.mrf.mxu1  ;;  %v954_v21 = vadd.f32 %v953_v13, %v2741_v32 }
 0x158   :  { %v955_v22 = vpop.f32.mrf.mxu0 }
 0x159   :  { %v1068_v23 = vpop.f32.mrf.mxu1  ;;  %v1067_v24 = vadd.f32 %v1066_v15, %v954_v21  ;;  %v956_v25 = vadd.f32 %v955_v22, %v2743_v33 }
 0x15a   :  { %v957_v27 = vpop.f32.mrf.mxu0 }
 0x15b   :  { %v1070_v35 = vpop.f32.mrf.mxu1  ;;  %v1069_v36 = vadd.f32 %v1068_v23, %v956_v25  ;;  %v958_v25 = vadd.f32 %v957_v27, %v2741_v32  ;;  %v890_v27 = vadd.f32 %v2755_v44, %v2743_v33 }
 0x15c   :  { %v2846_v37 = vpop.f32.mrf.mxu0 }
 0x15d   :  { %3000 = vst [vmem:[#allocation12_spill] sm:$0xff] %v2846_v37  ;;  %v2848_v38 = vpop.f32.mrf.mxu1 }
 0x15e   :  { %3001 = vst [vmem:[#allocation13_spill] sm:$0xff] %v2848_v38  ;;  %v1109_v47 = vpop.f32.mrf.mxu0 }
 0x15f   :  { %v1169_v59 = vpop.f32.mrf.mxu1 }
 0x160   :  { %v2851_v60 = vadd.f32 %v1169_v59, %v1057_v6  ;;  %v1111_v61 = vpop.f32.mrf.mxu0 }
 0x161   :  { %v1171_v62 = vpop.f32.mrf.mxu1  ;;  %v1112_v41 = vadd.f32 %v1111_v61, %v2753_v43 }
 0x162   :  { %3002 = vst [vmem:[#allocation14_spill] sm:$0xff] %v2851_v60  ;;  %v2853_v7 = vadd.f32 %v1171_v62, %v1059_v10  ;;  %v1113_v13 = vpop.f32.mrf.mxu0  ;;  %v1071_v60 = vadd.f32 %v1070_v35, %v958_v25  ;;  %v1110_v35 = vadd.f32 %v1109_v47, %v2746_v39 }
 0x163   :  { %v1173_v15 = vpop.f32.mrf.mxu1 }
 0x164   :  { %3003 = vst [vmem:[#allocation15_spill] sm:$0xff] %v2853_v7  ;;  %v2855_v21 = vadd.f32 %v1173_v15, %v1061_v0  ;;  %v1115_v22 = vpop.f32.mrf.mxu0 }
 0x165   :  { %v2857_v23 = vpop.f32.mrf.mxu1 }
 0x166   :  { %3004 = vst [vmem:[#allocation16_spill] sm:$0xff] %v2855_v21  ;;  %3005 = vst [vmem:[#allocation17_spill] sm:$0xff] %v2857_v23  ;;  %v1119_v38 = vpop.f32.mrf.mxu0 }
 0x167   :  { %v1179_v8 = vpop.f32.mrf.mxu1 }
 0x168   :  { %v2860_v37 = vadd.f32 %v1179_v8, %v1067_v24  ;;  %v1121_v6 = vpop.f32.mrf.mxu0 }
 0x169   :  { %v1181_v59 = vpop.f32.mrf.mxu1 }
 0x16a   :  { %3006 = vst [vmem:[#allocation18_spill] sm:$0xff] %v2860_v37  ;;  %v2862_v12 = vadd.f32 %v1181_v59, %v1069_v36  ;;  %v1123_v9 = vpop.f32.mrf.mxu0  ;;  %v1001_v37 = vadd.f32 %v2751_v42, %v888_v40  ;;  %v1003_v59 = vadd.f32 %v2757_v45, %v890_v27  ;;  %v900_v42 = vadd.f32 %v2769_v56, %v2743_v33 }
 0x16b   :  { %v1183_v10 = vpop.f32.mrf.mxu1  ;;  %v1122_v56 = vadd.f32 %v1121_v6, %v2767_v55 }
 0x16c   :  { %3007 = vst [vmem:[#allocation19_spill] sm:$0xff] %v2862_v12  ;;  %v2866_v62 = vadd.f32 %v1183_v10, %v1071_v60  ;;  %v1125_v0 = vpop.f32.mrf.mxu0  ;;  %v1114_v60 = vadd.f32 %v1113_v13, %v1001_v37  ;;  %v1116_v44 = vadd.f32 %v1115_v22, %v1003_v59  ;;  %v1120_v13 = vadd.f32 %v1119_v38, %v2760_v51 }
 0x16d   :  { %v2868_v15 = vpop.f32.mrf.mxu1  ;;  %v1013_v22 = vadd.f32 %v2771_v57, %v900_v42  ;;  %v910_v38 = vadd.f32 %v2783_v4, %v2743_v33 }
 0x16e   :  { %3008 = vst [vmem:[#allocation20_spill] sm:$0xff] %v2866_v62  ;;  %3009 = vst [vmem:[#allocation21_spill] sm:$0xff] %v2868_v15  ;;  %v1129_v24 = vpop.f32.mrf.mxu0  ;;  %v898_v62 = vadd.f32 %v2763_v53, %v2741_v32 }
 0x16f   :  { %v1222_v8 = vpop.f32.mrf.mxu1 }
 0x170   :  { %v1131_v36 = vpop.f32.mrf.mxu0  ;;  %v1223_v10 = vadd.f32 %v1222_v8, %v1110_v35  ;;  %v1011_v43 = vadd.f32 %v2765_v54, %v898_v62 }
 0x171   :  { %v1224_v25 = vpop.f32.mrf.mxu1  ;;  %v1132_v4 = vadd.f32 %v1131_v36, %v2781_v3 }
 0x172   :  { %v1133_v12 = vpop.f32.mrf.mxu0  ;;  %v1225_v21 = vadd.f32 %v1224_v25, %v1112_v41  ;;  %v1301_v40 = vmax.f32 %v1223_v10, 0.0  ;;  %v1124_v25 = vadd.f32 %v1123_v9, %v1011_v43 }
 0x173   :  { %v1226_v15 = vpop.f32.mrf.mxu1 }
 0x174   :  { %v1227_v7 = vadd.f32 %v1226_v15, %v1114_v60  ;;  %v1135_v39 = vpop.f32.mrf.mxu0  ;;  %v1302_v53 = vmax.f32 %v1225_v21, 0.0  ;;  %v1126_v60 = vadd.f32 %v1125_v0, %v1013_v22 }
 0x175   :  { %v1228_v47 = vpop.f32.mrf.mxu1 }
 0x176   :  { %v1303_v23 = vmax.f32 %v1227_v7, 0.0  ;;  %v1229_v45 = vadd.f32 %v1228_v47, %v1116_v44  ;;  %v1139_v37 = vpop.f32.mrf.mxu0  ;;  %v908_v7 = vadd.f32 %v2777_v1, %v2741_v32  ;;  %v1130_v1 = vadd.f32 %v1129_v24, %v2774_v63 }
 0x177   :  { %v1232_v61 = vpop.f32.mrf.mxu1  ;;  %v920_v63 = vadd.f32 %v2806_v19, %v2743_v33 }
 0x178   :  { %v1333_v27 = vpack.c.bf16 %v1303_v23, %v1301_v40  ;;  %v1304_v8 = vmax.f32 %v1229_v45, 0.0  ;;  %v1141_v15 = vpop.f32.mrf.mxu0  ;;  %v1233_v41 = vadd.f32 %v1232_v61, %v1120_v13  ;;  %v1021_v9 = vadd.f32 %v2779_v2, %v908_v7 }
 0x179   :  { %v1234_v35 = vpop.f32.mrf.mxu1  ;;  %v1023_v45 = vadd.f32 %v2785_v5, %v910_v38  ;;  %v1142_v19 = vadd.f32 %v1141_v15, %v2804_v18 }
 0x17a   :  { %v1334_v59 = vpack.c.bf16 %v1304_v8, %v1302_v53  ;;  %v1143_v54 = vpop.f32.mrf.mxu0  ;;  %v1235_v10 = vadd.f32 %v1234_v35, %v1122_v56  ;;  %v1305_v23 = vmax.f32 %v1233_v41, 0.0  ;;  %v1134_v13 = vadd.f32 %v1133_v12, %v1021_v9 }
 0x17b   :  { %v1236_v62 = vpop.f32.mrf.mxu1  ;;  %v918_v8 = vadd.f32 %v2800_v16, %v2741_v32  ;;  %v1136_v22 = vadd.f32 %v1135_v39, %v1023_v45  ;;  %v1140_v41 = vadd.f32 %v1139_v37, %v2797_v14  ;;  %v930_v14 = vadd.f32 %v2820_v31, %v2743_v33 }
 0x17c   :  { %v1237_v51 = vadd.f32 %v1236_v62, %v1124_v25  ;;  %1516 = vmatprep.mubr.bf16.mxu0 %v1334_v59  ;;  %v1145_v57 = vpop.f32.mrf.mxu0  ;;  %v1306_v47 = vmax.f32 %v1235_v10, 0.0  ;;  %v1033_v62 = vadd.f32 %v2808_v20, %v920_v63 }
 0x17d   :  { %v1238_v21 = vpop.f32.mrf.mxu1  ;;  %1517 = vmatmul.mubr.bf16.vlgmr.msra.gmra.mxu0 %v1333_v27  ;;  %v1031_v12 = vadd.f32 %v2802_v17, %v918_v8 }
 0x17e   :  { %v1307_v55 = vmax.f32 %v1237_v51, 0.0  ;;  %v1239_v6 = vadd.f32 %v1238_v21, %v1126_v60  ;;  %v1149_v44 = vpop.f32.mrf.mxu0  ;;  %v1146_v17 = vadd.f32 %v1145_v57, %v1033_v62 }
 0x17f   :  { %v1242_v42 = vpop.f32.mrf.mxu1  ;;  %v1144_v51 = vadd.f32 %v1143_v54, %v1031_v12 }
 0x180   :  { %v1335_v0 = vpack.c.bf16 %v1307_v55, %v1305_v23  ;;  %v1308_v40 = vmax.f32 %v1239_v6, 0.0  ;;  %v1151_v43 = vpop.f32.mrf.mxu0  ;;  %v1243_v27 = vadd.f32 %v1242_v42, %v1130_v1  ;;  %v928_v23 = vadd.f32 %v2814_v28, %v2741_v32 }
 0x181   :  { %v1244_v61 = vpop.f32.mrf.mxu1  ;;  %v1152_v31 = vadd.f32 %v1151_v43, %v2818_v30 }
 0x182   :  { %v1336_v53 = vpack.c.bf16 %v1308_v40, %v1306_v47  ;;  %v1245_v35 = vadd.f32 %v1244_v61, %v1132_v4  ;;  %v1153_v24 = vpop.f32.mrf.mxu0  ;;  %v1309_v25 = vmax.f32 %v1243_v27, 0.0  ;;  %v1041_v15 = vadd.f32 %v2816_v29, %v928_v23  ;;  %v3010_v23 = vld [vmem:[#allocation11_spill] sm:$0xff] }
 0x183   :  { %v1246_v2 = vpop.f32.mrf.mxu1  ;;  %v1150_v47 = vadd.f32 %v1149_v44, %v2811_v26  ;;  %v1043_v40 = vadd.f32 %v2822_v34, %v930_v14  ;;  %v938_v27 = vadd.f32 %v2828_v48, %v2741_v32  ;;  %v940_v26 = vadd.f32 %v2834_v52, %v2743_v33 }
 0x184   :  { %v1247_v56 = vadd.f32 %v1246_v2, %v1134_v13  ;;  %1524 = vmatprep.mubr.bf16.mxu0 %v1336_v53  ;;  %v1310_v16 = vmax.f32 %v1245_v35, 0.0  ;;  %v1155_v60 = vpop.f32.mrf.mxu0  ;;  %v1154_v4 = vadd.f32 %v1153_v24, %v1041_v15 }
 0x185   :  { %v1248_v5 = vpop.f32.mrf.mxu1  ;;  %1525 = vmatmul.mubr.bf16.gmra.mxu0 %v1335_v0  ;;  %v1156_v29 = vadd.f32 %v1155_v60, %v1043_v40  ;;  %v1051_v43 = vadd.f32 %v2830_v49, %v938_v27 }
 0x186   :  { %v1311_v59 = vmax.f32 %v1247_v56, 0.0  ;;  %v1249_v3 = vadd.f32 %v1248_v5, %v1136_v22  ;;  %v1159_v37 = vpop.f32.mrf.mxu0 }
 0x187   :  { %v1252_v36 = vpop.f32.mrf.mxu1  ;;  %v1160_v24 = vadd.f32 %v1159_v37, %v2825_v46  ;;  %v950_v46 = vadd.f32 %v2840_v11, %v2743_v33  ;;  %v3012_v37 = vld [vmem:[#allocation17_spill] sm:$0xff] }
 0x188   :  { %v1337_v7 = vpack.c.bf16 %v1311_v59, %v1309_v25  ;;  %v1312_v39 = vmax.f32 %v1249_v3, 0.0  ;;  %v1253_v21 = vadd.f32 %v1252_v36, %v1140_v41  ;;  %v1161_v45 = vpop.f32.mrf.mxu0  ;;  %v1053_v25 = vadd.f32 %v2836_v58, %v940_v26 }
 0x189   :  { %v1254_v10 = vpop.f32.mrf.mxu1  ;;  %v1162_v52 = vadd.f32 %v1161_v45, %v2832_v50 }
 0x18a   :  { %v1338_v38 = vpack.c.bf16 %v1312_v39, %v1310_v16  ;;  %v1255_v6 = vadd.f32 %v1254_v10, %v1142_v19  ;;  %v1313_v42 = vmax.f32 %v1253_v21, 0.0  ;;  %v1163_v44 = vpop.f32.mrf.mxu0 }
 0x18b   :  { %v1256_v55 = vpop.f32.mrf.mxu1  ;;  %v1164_v12 = vadd.f32 %v1163_v44, %v1051_v43  ;;  %v3019_v44 = vld [vmem:[#allocation19_spill] sm:$0xff] }
 0x18c   :  { %v1257_v9 = vadd.f32 %v1256_v55, %v1144_v51  ;;  %1532 = vmatprep.mubr.bf16.mxu0 %v1338_v38  ;;  %v1314_v28 = vmax.f32 %v1255_v6, 0.0  ;;  %v1165_v59 = vpop.f32.mrf.mxu0  ;;  %v1063_v55 = vadd.f32 %v3010_v23, %v950_v46  ;;  %v3011_v6 = vld [vmem:[#allocation14_spill] sm:$0xff] }
 0x18d   :  { %v1258_v20 = vpop.f32.mrf.mxu1  ;;  %1533 = vmatmul.mubr.bf16.gmra.mxu0 %v1337_v7  ;;  %v1166_v7 = vadd.f32 %v1165_v59, %v1053_v25  ;;  %v2258_v25 = vld [vmem:[%s2996_s5 + $0x20] sm:$0xff]   ;;  %v2259_v59 = vld [vmem:[%s2996_s5 + $0x18] sm:$0xff]  }
 0x18e   :  { %v1315_v1 = vmax.f32 %v1257_v9, 0.0  ;;  %v1259_v18 = vadd.f32 %v1258_v20, %v1146_v17  ;;  %v1176_v20 = vadd.f32 %v3012_v37, %v1063_v55  ;;  %2026 = vmatprep.subr.bf16.mxu1 %v2258_v25 }
 0x18f   :  { %v1262_v54 = vpop.f32.mrf.mxu1  ;;  %2027 = vmatpush3.bf16.msra.mxu1 %v2258_v25 }
 0x190   :  { %v1339_v0 = vpack.c.bf16 %v1315_v1, %v1313_v42  ;;  %v1316_v57 = vmax.f32 %v1259_v18, 0.0  ;;  %v1263_v53 = vadd.f32 %v1262_v54, %v1150_v47  ;;  %v3013_v42 = vld [vmem:[#allocation15_spill] sm:$0xff]  ;;  %v3014_v18 = vld [vmem:[#allocation16_spill] sm:$0xff]  ;;  %2028 = vmatprep.subr.bf16.mxu1 %v2259_v59 }
 0x191   :  { %v1264_v61 = vpop.f32.mrf.mxu1  ;;  %v3015_v54 = vld [vmem:[#allocation12_spill] sm:$0xff] }
 0x192   :  { %v1340_v13 = vpack.c.bf16 %v1316_v57, %v1314_v28  ;;  %v1265_v2 = vadd.f32 %v1264_v61, %v1152_v31  ;;  %v1317_v35 = vmax.f32 %v1263_v53, 0.0  ;;  %v960_v47 = vadd.f32 %v3015_v54, %v2743_v33 }
 0x193   :  { %v1266_v8 = vpop.f32.mrf.mxu1  ;;  %2029 = vmatpush3.bf16.msra.mxu1 %v2259_v59 }
 0x194   :  { %v1267_v22 = vadd.f32 %v1266_v8, %v1154_v4  ;;  %1540 = vmatprep.mubr.bf16.mxu0 %v1340_v13  ;;  %v1318_v32 = vmax.f32 %v1265_v2, 0.0  ;;  %v3016_v13 = vld [vmem:[#allocation13_spill] sm:$0xff]  ;;  %v3017_v8 = vld [vmem:[#allocation18_spill] sm:$0xff] }
 0x195   :  { %v1268_v34 = vpop.f32.mrf.mxu1  ;;  %1541 = vmatmul.mubr.bf16.gmra.mxu0 %v1339_v0  ;;  %v1073_v53 = vadd.f32 %v3016_v13, %v960_v47 }
 0x196   :  { %v1319_v56 = vmax.f32 %v1267_v22, 0.0  ;;  %v1269_v30 = vadd.f32 %v1268_v34, %v1156_v29  ;;  %v3018_v22 = vld [vmem:[#allocation21_spill] sm:$0xff] }
 0x197   :  { %v1272_v63 = vpop.f32.mrf.mxu1  ;;  %v1186_v26 = vadd.f32 %v3018_v22, %v1073_v53 }
 0x198   :  { %v1341_v48 = vpack.c.bf16 %v1319_v56, %v1317_v35  ;;  %v1320_v5 = vmax.f32 %v1269_v30, 0.0  ;;  %v1273_v41 = vadd.f32 %v1272_v63, %v1160_v24  ;;  %v3020_v35 = vld [vmem:[#allocation20_spill] sm:$0xff] }
 0x199   :  { %v1274_v3 = vpop.f32.mrf.mxu1 }
 0x19a   :  { %v1342_v36 = vpack.c.bf16 %v1320_v5, %v1318_v32  ;;  %v1275_v39 = vadd.f32 %v1274_v3, %v1162_v52  ;;  %v1321_v60 = vmax.f32 %v1273_v41, 0.0  ;;  %v2260_v3 = vld [vmem:[%s2996_s5 + $0x10] sm:$0xff]   ;;  %v2261_v52 = vld [vmem:[%s2996_s5 + $0x8] sm:$0xff]  }
 0x19b   :  { %v1276_v16 = vpop.f32.mrf.mxu1  ;;  %2030 = vmatprep.subr.bf16.mxu1 %v2260_v3 }
 0x19c   :  { %v1277_v62 = vadd.f32 %v1276_v16, %v1164_v12  ;;  %1548 = vmatprep.mubr.bf16.mxu0 %v1342_v36  ;;  %v1322_v51 = vmax.f32 %v1275_v39, 0.0  ;;  %2031 = vmatpush3.bf16.msra.mxu1 %v2260_v3  ;;  %v2262_v12 = vld [vmem:[%s2996_s5] sm:$0xff]  }
 0x19d   :  { %v1278_v49 = vpop.f32.mrf.mxu1  ;;  %1549 = vmatmul.mubr.bf16.gmra.mxu0 %v1341_v48  ;;  %2032 = vmatprep.subr.bf16.mxu1 %v2261_v52 }
 0x19e   :  { %v1323_v10 = vmax.f32 %v1277_v62, 0.0  ;;  %v1279_v58 = vadd.f32 %v1278_v49, %v1166_v7  ;;  %v2948_v7 = vld [vmem:[%s2995_s4] ss:$0 sm:$0xff] }
 0x19f   :  { %v1282_v19 = vpop.f32.mrf.mxu1 }
 0x1a0   :  { %v1343_v38 = vpack.c.bf16 %v1323_v10, %v1321_v60  ;;  %v1324_v50 = vmax.f32 %v1279_v58, 0.0  ;;  %v1283_v9 = vadd.f32 %v1282_v19, %v3011_v6  ;;  %2033 = vmatpush3.bf16.msra.mxu1 %v2261_v52 }
 0x1a1   :  { %v1284_v21 = vpop.f32.mrf.mxu1  ;;  %2034 = vmatprep.subr.bf16.mxu1 %v2262_v12 }
 0x1a2   :  { %v1344_v17 = vpack.c.bf16 %v1324_v50, %v1322_v51  ;;  %v1285_v1 = vadd.f32 %v1284_v21, %v3013_v42  ;;  %v1325_v28 = vmax.f32 %v1283_v9, 0.0 }
 0x1a3   :  { %v1286_v14 = vpop.f32.mrf.mxu1 }
 0x1a4   :  { %v1287_v11 = vadd.f32 %v1286_v14, %v3014_v18  ;;  %1556 = vmatprep.mubr.bf16.mxu0 %v1344_v17  ;;  %v1326_v45 = vmax.f32 %v1285_v1, 0.0  ;;  %2035 = vmatpush3.bf16.msra.mxu1 %v2262_v12 }
 0x1a5   :  { %v1288_v15 = vpop.f32.mrf.mxu1  ;;  %1557 = vmatmul.mubr.bf16.gmra.mxu0 %v1343_v38 }
 0x1a6   :  { %v1327_v0 = vmax.f32 %v1287_v11, 0.0  ;;  %v1289_v57 = vadd.f32 %v1288_v15, %v1176_v20 }
 0x1a7   :  { %v1292_v40 = vpop.f32.mrf.mxu1 }
 0x1a8   :  { %v1345_v61 = vpack.c.bf16 %v1327_v0, %v1325_v28  ;;  %v1328_v31 = vmax.f32 %v1289_v57, 0.0  ;;  %v1293_v29 = vadd.f32 %v1292_v40, %v3017_v8 }
 0x1a9   :  { %v1294_v4 = vpop.f32.mrf.mxu1 }
 0x1aa   :  { %v1346_v27 = vpack.c.bf16 %v1328_v31, %v1326_v45  ;;  %v1295_v34 = vadd.f32 %v1294_v4, %v3019_v44  ;;  %v1329_v30 = vmax.f32 %v1293_v29, 0.0 }
 0x1ab   :  { %v1296_v2 = vpop.f32.mrf.mxu1 }
 0x1ac   :  { %v1297_v33 = vadd.f32 %v1296_v2, %v3020_v35  ;;  %1564 = vmatprep.mubr.bf16.mxu0 %v1346_v27  ;;  %v1330_v24 = vmax.f32 %v1295_v34, 0.0 }
 0x1ad   :  { %v1298_v56 = vpop.f32.mrf.mxu1  ;;  %1565 = vmatmul.mubr.bf16.gmra.mxu0 %v1345_v61 }
 0x1ae   :  { %v1331_v43 = vmax.f32 %v1297_v33, 0.0  ;;  %v1299_v63 = vadd.f32 %v1298_v56, %v1186_v26 }
 0x1b0   :  { %v1347_v32 = vpack.c.bf16 %v1331_v43, %v1329_v30  ;;  %v1332_v48 = vmax.f32 %v1299_v63, 0.0 }
 0x1b2   :  { %v1348_v5 = vpack.c.bf16 %v1332_v48, %v1330_v24 }
 0x1b4   :  { %1572 = vmatprep.mubr.bf16.mxu0 %v1348_v5 }
 0x1b5   :  { %1573 = vmatmul.mubr.bf16.gmra.mxu0 %v1347_v32 }
 0x23d   :  { %v1956_v36 = vpop.f32.mrf.mxu0 }
 0x23f   :  { %v1957_v41 = vpop.f32.mrf.mxu0 }
 0x240   :  { %v1958_v16 = vadd.f32 %v1957_v41, %v1956_v36 }
 0x241   :  { %v1959_v39 = vpop.f32.mrf.mxu0 }
 0x242   :  { %v1519_v49 = vadd.f32 %v1958_v16, %v2948_v7 }
 0x243   :  { %v1960_v62 = vpop.f32.mrf.mxu0 }
 0x244   :  { %v1961_v46 = vadd.f32 %v1960_v62, %v1959_v39  ;;  %v1581_v19 = vmax.f32 %v1519_v49, 0.0 }
 0x245   :  { %v1962_v60 = vpop.f32.mrf.mxu0 }
 0x246   :  { %v1522_v10 = vadd.f32 %v1961_v46, %v2948_v7 }
 0x247   :  { %v1963_v58 = vpop.f32.mrf.mxu0 }
 0x248   :  { %v1582_v51 = vmax.f32 %v1522_v10, 0.0  ;;  %v1964_v38 = vadd.f32 %v1963_v58, %v1962_v60 }
 0x249   :  { %v1965_v50 = vpop.f32.mrf.mxu0 }
 0x24a   :  { %v1597_v21 = vpack.c.bf16 %v1582_v51, %v1581_v19  ;;  %v1527_v55 = vadd.f32 %v1964_v38, %v2948_v7 }
 0x24b   :  { %v1966_v23 = vpop.f32.mrf.mxu0 }
 0x24c   :  { %v1967_v17 = vadd.f32 %v1966_v23, %v1965_v50  ;;  %2036 = vmatprep.mubr.bf16.mxu1 %v1597_v21  ;;  %v1583_v37 = vmax.f32 %v1527_v55, 0.0 }
 0x24d   :  { %v1968_v6 = vpop.f32.mrf.mxu0 }
 0x24e   :  { %v1530_v9 = vadd.f32 %v1967_v17, %v2948_v7 }
 0x24f   :  { %v1969_v14 = vpop.f32.mrf.mxu0 }
 0x250   :  { %v1584_v20 = vmax.f32 %v1530_v9, 0.0  ;;  %v1970_v42 = vadd.f32 %v1969_v14, %v1968_v6 }
 0x251   :  { %v1971_v1 = vpop.f32.mrf.mxu0 }
 0x252   :  { %v1598_v18 = vpack.c.bf16 %v1584_v20, %v1583_v37  ;;  %v1535_v15 = vadd.f32 %v1970_v42, %v2948_v7 }
 0x253   :  { %v1972_v11 = vpop.f32.mrf.mxu0 }
 0x254   :  { %v1973_v54 = vadd.f32 %v1972_v11, %v1971_v1  ;;  %2037 = vmatmul.mubr.bf16.vlgmr.msra.gmra.mxu1 %v1598_v18  ;;  %v1585_v57 = vmax.f32 %v1535_v15, 0.0  ;;  %v1931_v18 = vld [vmem:[%s2997_s6] ss:$0 sm:$0xff] }
 0x255   :  { %v1974_v47 = vpop.f32.mrf.mxu0 }
 0x256   :  { %v1538_v28 = vadd.f32 %v1973_v54, %v2948_v7 }
 0x257   :  { %v1975_v0 = vpop.f32.mrf.mxu0 }
 0x258   :  { %v1586_v40 = vmax.f32 %v1538_v28, 0.0  ;;  %v1976_v45 = vadd.f32 %v1975_v0, %v1974_v47 }
 0x259   :  { %v1977_v61 = vpop.f32.mrf.mxu0 }
 0x25a   :  { %v1599_v31 = vpack.c.bf16 %v1586_v40, %v1585_v57  ;;  %v1543_v13 = vadd.f32 %v1976_v45, %v2948_v7 }
 0x25b   :  { %v1978_v4 = vpop.f32.mrf.mxu0 }
 0x25c   :  { %v1979_v53 = vadd.f32 %v1978_v4, %v1977_v61  ;;  %2040 = vmatprep.mubr.bf16.mxu1 %v1599_v31  ;;  %v1587_v2 = vmax.f32 %v1543_v13, 0.0 }
 0x25d   :  { %v1980_v27 = vpop.f32.mrf.mxu0 }
 0x25e   :  { %v1546_v8 = vadd.f32 %v1979_v53, %v2948_v7 }
 0x25f   :  { %v1981_v29 = vpop.f32.mrf.mxu0 }
 0x260   :  { %v1588_v22 = vmax.f32 %v1546_v8, 0.0  ;;  %v1982_v26 = vadd.f32 %v1981_v29, %v1980_v27 }
 0x261   :  { %v1983_v44 = vpop.f32.mrf.mxu0 }
 0x262   :  { %v1600_v34 = vpack.c.bf16 %v1588_v22, %v1587_v2  ;;  %v1551_v33 = vadd.f32 %v1982_v26, %v2948_v7 }
 0x263   :  { %v1984_v35 = vpop.f32.mrf.mxu0 }
 0x264   :  { %v1985_v56 = vadd.f32 %v1984_v35, %v1983_v44  ;;  %2041 = vmatmul.mubr.bf16.gmra.mxu1 %v1600_v34  ;;  %v1589_v24 = vmax.f32 %v1551_v33, 0.0 }
 0x265   :  { %v1986_v30 = vpop.f32.mrf.mxu0 }
 0x266   :  { %v1554_v43 = vadd.f32 %v1985_v56, %v2948_v7 }
 0x267   :  { %v1987_v63 = vpop.f32.mrf.mxu0 }
 0x268   :  { %v1590_v32 = vmax.f32 %v1554_v43, 0.0  ;;  %v1988_v48 = vadd.f32 %v1987_v63, %v1986_v30 }
 0x269   :  { %v1989_v5 = vpop.f32.mrf.mxu0 }
 0x26a   :  { %v1601_v25 = vpack.c.bf16 %v1590_v32, %v1589_v24  ;;  %v1559_v3 = vadd.f32 %v1988_v48, %v2948_v7 }
 0x26b   :  { %v1990_v59 = vpop.f32.mrf.mxu0 }
 0x26c   :  { %v1991_v52 = vadd.f32 %v1990_v59, %v1989_v5  ;;  %2044 = vmatprep.mubr.bf16.mxu1 %v1601_v25  ;;  %v1591_v16 = vmax.f32 %v1559_v3, 0.0 }
 0x26d   :  { %v1992_v12 = vpop.f32.mrf.mxu0 }
 0x26e   :  { %v1562_v36 = vadd.f32 %v1991_v52, %v2948_v7 }
 0x26f   :  { %v1993_v41 = vpop.f32.mrf.mxu0 }
 0x270   :  { %v1592_v39 = vmax.f32 %v1562_v36, 0.0  ;;  %v1994_v62 = vadd.f32 %v1993_v41, %v1992_v12 }
 0x271   :  { %v1995_v49 = vpop.f32.mrf.mxu0 }
 0x272   :  { %v1602_v46 = vpack.c.bf16 %v1592_v39, %v1591_v16  ;;  %v1567_v10 = vadd.f32 %v1994_v62, %v2948_v7 }
 0x273   :  { %v1996_v60 = vpop.f32.mrf.mxu0 }
 0x274   :  { %v1997_v58 = vadd.f32 %v1996_v60, %v1995_v49  ;;  %2045 = vmatmul.mubr.bf16.gmra.mxu1 %v1602_v46  ;;  %v1593_v50 = vmax.f32 %v1567_v10, 0.0 }
 0x275   :  { %v1998_v19 = vpop.f32.mrf.mxu0 }
 0x276   :  { %v1570_v51 = vadd.f32 %v1997_v58, %v2948_v7 }
 0x277   :  { %v1999_v38 = vpop.f32.mrf.mxu0 }
 0x278   :  { %v1594_v21 = vmax.f32 %v1570_v51, 0.0  ;;  %v2000_v23 = vadd.f32 %v1999_v38, %v1998_v19 }
 0x279   :  { %v2001_v55 = vpop.f32.mrf.mxu0 }
 0x27a   :  { %v1603_v17 = vpack.c.bf16 %v1594_v21, %v1593_v50  ;;  %v1575_v9 = vadd.f32 %v2000_v23, %v2948_v7 }
 0x27b   :  { %v2002_v6 = vpop.f32.mrf.mxu0 }
 0x27c   :  { %v2003_v14 = vadd.f32 %v2002_v6, %v2001_v55  ;;  %2048 = vmatprep.mubr.bf16.mxu1 %v1603_v17  ;;  %v1595_v20 = vmax.f32 %v1575_v9, 0.0 }
 0x27e   :  { %v1578_v37 = vadd.f32 %v2003_v14, %v2948_v7 }
 0x280   :  { %v1596_v42 = vmax.f32 %v1578_v37, 0.0 }
 0x282   :  { %v1604_v1 = vpack.c.bf16 %v1596_v42, %v1595_v20 }
 0x284   :  { %2049 = vmatmul.mubr.bf16.gmra.mxu1 %v1604_v1 }
 0x314   :  { %v2038_v11 = vpop.f32.mrf.mxu1 }
 0x315   :  { %v1719_v15 = vadd.f32 %v2038_v11, %v1931_v18 }
 0x316   :  { %v1710_v54 = vpop.f32.mrf.mxu1 }
 0x317   :  { %1776 = vst.msk [vmem:[#allocation7 + $0x10] sm:$0xff] %vm1773_vm1, %v1719_v15  ;;  %v1711_v47 = vadd.f32 %v1931_v18, %v1710_v54 }
 0x318   :  { %v2039_v28 = vpop.f32.mrf.mxu1 }
 0x319   :  { %1774 = vst.msk [vmem:[#allocation7] sm:$0xff] %vm1773_vm1, %v1711_v47  ;;  %v1722_v0 = vadd.f32 %v2039_v28, %v1931_v18 }
 0x31a   :  { %v1713_v7 = vpop.f32.mrf.mxu1 }
 0x31b   :  { %1777 = vst.msk [vmem:[#allocation7 + $0x18] sm:$0xff] %vm1773_vm1, %v1722_v0  ;;  %v1714_v57 = vadd.f32 %v1931_v18, %v1713_v7 }
 0x31d   :  { %1775 = vst.msk [vmem:[#allocation7 + $0x8] sm:$0xff] %vm1773_vm1, %v1714_v57 }
 0x324   :  { %v2042_v40 = vpop.f32.mrf.mxu1 }
 0x325   :  { %v1735_v45 = vadd.f32 %v2042_v40, %v1931_v18 }
 0x326   :  { %v1726_v61 = vpop.f32.mrf.mxu1 }
 0x327   :  { %1780 = vst.msk [vmem:[#allocation7 + $0x30] sm:$0xff] %vm1773_vm1, %v1735_v45  ;;  %v1727_v31 = vadd.f32 %v1931_v18, %v1726_v61 }
 0x328   :  { %v2043_v4 = vpop.f32.mrf.mxu1 }
 0x329   :  { %1778 = vst.msk [vmem:[#allocation7 + $0x20] sm:$0xff] %vm1773_vm1, %v1727_v31  ;;  %v1738_v13 = vadd.f32 %v2043_v4, %v1931_v18 }
 0x32a   :  { %v1729_v53 = vpop.f32.mrf.mxu1 }
 0x32b   :  { %1781 = vst.msk [vmem:[#allocation7 + $0x38] sm:$0xff] %vm1773_vm1, %v1738_v13  ;;  %v1730_v27 = vadd.f32 %v1931_v18, %v1729_v53 }
 0x32d   :  { %1779 = vst.msk [vmem:[#allocation7 + $0x28] sm:$0xff] %vm1773_vm1, %v1730_v27 }
 0x334   :  { %v2046_v8 = vpop.f32.mrf.mxu1 }
 0x335   :  { %v1751_v29 = vadd.f32 %v2046_v8, %v1931_v18 }
 0x336   :  { %v1742_v2 = vpop.f32.mrf.mxu1 }
 0x337   :  { %1784 = vst.msk [vmem:[#allocation7 + $0x50] sm:$0xff] %vm1773_vm1, %v1751_v29  ;;  %v1743_v22 = vadd.f32 %v1931_v18, %v1742_v2 }
 0x338   :  { %v2047_v26 = vpop.f32.mrf.mxu1 }
 0x339   :  { %1782 = vst.msk [vmem:[#allocation7 + $0x40] sm:$0xff] %vm1773_vm1, %v1743_v22  ;;  %v1754_v44 = vadd.f32 %v2047_v26, %v1931_v18 }
 0x33a   :  { %v1745_v34 = vpop.f32.mrf.mxu1 }
 0x33b   :  { %1785 = vst.msk [vmem:[#allocation7 + $0x58] sm:$0xff] %vm1773_vm1, %v1754_v44  ;;  %v1746_v35 = vadd.f32 %v1931_v18, %v1745_v34 }
 0x33d   :  { %1783 = vst.msk [vmem:[#allocation7 + $0x48] sm:$0xff] %vm1773_vm1, %v1746_v35 }
 0x344   :  { %v2050_v33 = vpop.f32.mrf.mxu1 }
 0x345   :  { %v1767_v56 = vadd.f32 %v2050_v33, %v1931_v18 }
 0x346   :  { %v1758_v30 = vpop.f32.mrf.mxu1 }
 0x347   :  { %1788 = vst.msk [vmem:[#allocation7 + $0x70] sm:$0xff] %vm1773_vm1, %v1767_v56  ;;  %v1759_v43 = vadd.f32 %v1931_v18, %v1758_v30 }
 0x348   :  { %v2051_v63 = vpop.f32.mrf.mxu1 }
 0x349   :  { %1786 = vst.msk [vmem:[#allocation7 + $0x60] sm:$0xff] %vm1773_vm1, %v1759_v43  ;;  %v1770_v24 = vadd.f32 %v2051_v63, %v1931_v18 }
 0x34a   :  { %v1761_v32 = vpop.f32.mrf.mxu1 }
 0x34b   :  { %1789 = vst.msk [vmem:[#allocation7 + $0x78] sm:$0xff] %vm1773_vm1, %v1770_v24  ;;  %v1762_v48 = vadd.f32 %v1931_v18, %v1761_v32 }
 0x34d   :  { %1787 = vst.msk [vmem:[#allocation7 + $0x68] sm:$0xff] %vm1773_vm1, %v1762_v48 }
 0x34e   :  { %1794 = vsyncadd [#allocation4], 1920  ;;  %s2336_s6 = smov [#allocation7]  }
 0x34f   :  { %s1795_s25 = sshll.u32 %s2336_s6, 4  ;;  %s1796_s25 = int_to_ptr.vmem [resolvable:$true] %s1795_s25 }
 0x350   :  { %s2303_s26 = scalar_lea.vmem %s1796_s25, 128  ;;  %s2307_s29 = scalar_lea.vmem %s1796_s25, 2048 }
 0x351   :  { %p2304_p10 = scmp.ne.s32.totalorder %s1796_s25, %s2303_s26  ;;  %p2308_p11 = scmp.lt.s32.totalorder %s1796_s25, %s1796_s25 }
 0x352   :  { %p2309_p12 = scmp.lt.s32.totalorder %s2307_s29, %s2303_s26 }
 0x354   :  { %p2310_p13 = por %p2309_p12, %p2308_p11 }
 0x356   :  { %p2311_p0 = pnand %p2310_p13, %p2304_p10 }
 0x358   :  { %2314 = shalt.err (!%p2311_p0)
}
 0x359   :  { %1801 = dma.vmem_to_hbm [thread:$0]  %s1796_s25, 128, %s2998_s7, [#allocation4], %s2330_s27, %s2330_s27, %s2331_s28  }
 0x35a   :  { %2327 = dma.done.wait [#allocation4], 2048  }
 0x35b   :  { %2328 = vsyncadd [#allocation4], 4294965248 }
 0x35c   :  { %1805 = vsyncpa [#allocation3], 1 }
 0x35d   :  { %1806 = vsyncpa [#allocation6], 1 }
 0x35e   :  { %1807 = vsyncpa [#allocation4], 1 }

</bundles_post_ra>
